<compile_context>
chip_gen: v7x
topology: tpu7x:2x2x1
jax: 0.10.0
libtpu: 0.0.40
codegen_flags: <defaults>
</compile_context>

<pallas_src>
import jax
import jax.numpy as jnp
from jax.experimental import pallas as pl
from jax.experimental.pallas import tpu as pltpu


def _round_up(n, m):
    return ((n + m - 1) // m) * m


def mlp_kernel(x_ref,
               w1_ref, b1_ref,
               w2_ref, b2_ref,
               w3_ref, b3_ref,
               w4_ref, b4_ref,
               w5_ref, b5_ref,
               o_ref):
    """One batch tile in (features, batch) orientation: (5, TB) -> (1, TB).

    w1..w4: bf16 (out, in); b1..b4: f32 (out, 1); w5: f32 (16, 1); b5: f32 (1, 1).
    """
    xt = x_ref[...].astype(jnp.bfloat16)                      # (5, TB)

    # layer 1: (512,5) @ (5,TB) -- tiny K, still cheapest on the MXU (see header).
    h = jnp.dot(w1_ref[...], xt, preferred_element_type=jnp.float32)
    h = jnp.maximum(h + b1_ref[...], 0.0)                     # (512, TB) f32

    # layer 2: (128,512) @ (512,TB) -- ~96% of the FLOPs
    h = jnp.dot(w2_ref[...], h.astype(jnp.bfloat16),
                preferred_element_type=jnp.float32)
    h = jnp.maximum(h + b2_ref[...], 0.0)                     # (128, TB)

    # layer 3: (32,128) @ (128,TB)
    h = jnp.dot(w3_ref[...], h.astype(jnp.bfloat16),
                preferred_element_type=jnp.float32)
    h = jnp.maximum(h + b3_ref[...], 0.0)                     # (32, TB)

    # layer 4: (16,32) @ (32,TB)
    h = jnp.dot(w4_ref[...], h.astype(jnp.bfloat16),
                preferred_element_type=jnp.float32)
    h = jnp.maximum(h + b4_ref[...], 0.0)                     # (16, TB)

    # output layer (16 -> 1): VPU multiply + sublane (XLU) reduction in f32,
    # producing a lane-dense (1, TB) row directly -- no M=1 MXU pass, no
    # transposes, no masked stores.
    y = jnp.sum(h * w5_ref[...], axis=0, keepdims=True) + b5_ref[...]   # (1, TB)

    # sigmoid: clamp so exp never overflows (sigmoid(-80) ~ 0 in f32), exp on
    # the EUP, approximate reciprocal also on the EUP slot (review item).
    y = jnp.maximum(y, -80.0)
    o_ref[...] = pl.reciprocal(1.0 + jnp.exp(-y), approx=True).astype(o_ref.dtype)


def neural_network_forward(x, params, *, block_b=4096):
    """x: (B, 5) float32; params: [(W, b)] in PyTorch layout, W: (out, in), b: (out,)."""
    B, F = x.shape
    (w1, b1), (w2, b2), (w3, b3), (w4, b4), (w5, b5) = params

    # bf16 weights for the MXU layers; biases as (out, 1) f32 columns; the
    # 16->1 weight becomes an f32 column used on the VPU.
    w1b, w2b, w3b, w4b = (w.astype(jnp.bfloat16) for w in (w1, w2, w3, w4))
    b1c, b2c, b3c, b4c = (b.reshape(-1, 1).astype(jnp.float32)
                          for b in (b1, b2, b3, b4))
    w5c = w5.reshape(-1, 1).astype(jnp.float32)               # (16, 1)
    b5c = b5.reshape(1, 1).astype(jnp.float32)                # (1, 1)

    # Batch tile: batch lives on the lane axis -> multiple of 128.
    # Default 4096: ~16 MiB activations, safe on v7x (64 MiB VMEM); v5e/v6e
    # (128 MiB) can pass block_b=8192.  Ensure >=2 grid steps for large B so
    # both v7x TensorCores get work.
    block_b = max(128, _round_up(block_b, 128))
    TB = min(block_b, _round_up(B, 128))
    if B > 128:
        TB = min(TB, _round_up(pl.cdiv(B, 2), 128))
    padded_B = _round_up(B, TB)
    grid = (padded_B // TB,)

    # Lane-dense transposed input (5, padded_B): one cheap extra HBM pass over
    # x (B*20 bytes) in exchange for dense x/out blocks inside the kernel.
    xt = jnp.pad(x, ((0, padded_B - B), (0, 0))).T            # (5, padded_B)

    # Generation-aware VMEM limit: ~3/4 of physical, capped at 96 MiB
    # (-> 48 MiB on v7x, 96 MiB on v5e/v6e).
    try:
        vmem_cap = int(pltpu.get_tpu_info().vmem_capacity_bytes)
    except Exception:
        vmem_cap = 64 * 1024 * 1024
    vmem_limit = min(96 * 1024 * 1024, (vmem_cap * 3) // 4)

    def resident(arr):
        # Whole array as one block with a constant block index => fetched once
        # and kept VMEM-resident across all grid steps.
        return pl.BlockSpec(arr.shape, lambda i: (0, 0))

    flat = [w1b, b1c, w2b, b2c, w3b, b3c, w4b, b4c, w5c, b5c]

    out = pl.pallas_call(
        mlp_kernel,
        out_shape=jax.ShapeDtypeStruct((1, padded_B), jnp.float32),
        grid_spec=pltpu.PrefetchScalarGridSpec(
            num_scalar_prefetch=0,
            grid=grid,
            in_specs=[pl.BlockSpec((F, TB), lambda i: (0, i))]
                     + [resident(p) for p in flat],
            out_specs=pl.BlockSpec((1, TB), lambda i: (0, i)),
        ),
        compiler_params=pltpu.CompilerParams(
            dimension_semantics=("parallel",),   # batch tiles independent (v7x: 2 TCs)
            vmem_limit_bytes=vmem_limit,
        ),
    )(xt, *flat)
    return out[0, :B].reshape(B, 1)


def init_params(key):
    """PyTorch nn.Linear default init: U(-1/sqrt(fan_in), 1/sqrt(fan_in)),
    weights in PyTorch layout W: (out, in), b: (out,)."""
    layer_dims = [(5, 512), (512, 128), (128, 32), (32, 16), (16, 1)]
    params = []
    for (fan_in, fan_out) in layer_dims:
        key, kw, kb = jax.random.split(key, 3)
        bound = 1.0 / jnp.sqrt(jnp.float32(fan_in))
        W = jax.random.uniform(kw, (fan_out, fan_in), jnp.float32, -bound, bound)
        b = jax.random.uniform(kb, (fan_out,), jnp.float32, -bound, bound)
        params.append((W, b))
    return params


def reference_forward_f32(x, params):
    h = x
    for i, (W, b) in enumerate(params):
        h = h @ W.T + b
        if i < len(params) - 1:
            h = jnp.maximum(h, 0.0)
    return jax.nn.sigmoid(h)


def reference_forward_mixed(x, params):
    """Same numerics as the kernel: bf16 MXU inputs, f32 accumulation, f32 tail."""
    h = x
    for i, (W, b) in enumerate(params):
        if i < len(params) - 1:
            h = jnp.dot(h.astype(jnp.bfloat16), W.T.astype(jnp.bfloat16),
                        preferred_element_type=jnp.float32) + b
            h = jnp.maximum(h, 0.0)
        else:
            h = h @ W.T + b
    return jax.nn.sigmoid(h)


if __name__ == "__main__":
    key = jax.random.PRNGKey(0)
    key, kx = jax.random.split(key)

    B = 200  # not a multiple of the 128-wide tile -> exercises padding + 2-step grid
    x = jax.random.normal(kx, (B, 5), dtype=jnp.float32)
    params = init_params(key)

    out = neural_network_forward(x, params, block_b=128)
    out = jax.block_until_ready(out)
    assert out.shape == (B, 1), out.shape

    ref_mixed = reference_forward_mixed(x, params)
    ref_f32 = reference_forward_f32(x, params)
    err_mixed = float(jnp.max(jnp.abs(out - ref_mixed)))
    err_f32 = float(jnp.max(jnp.abs(out - ref_f32)))
    # 2e-3 covers the approx-reciprocal sigmoid (<~1e-3 abs) on top of matching
    # bf16/f32 math; 3e-2 covers bf16 rounding vs the pure-f32 reference.
    assert err_mixed < 2e-3, f"mismatch vs mixed-precision reference: {err_mixed}"
    assert err_f32 < 3e-2, f"mismatch vs f32 reference: {err_f32}"

    print("KERNEL_OK")
</pallas_src>

<mosaic_0001>
module attributes {stable_mosaic.version = 11 : i64} {
  func.func @mlp_kernel(%arg0: i32, %arg1: memref<5x128xf32, #tpu.memory_space<vmem>>, %arg2: memref<512x5xbf16, #tpu.memory_space<vmem>>, %arg3: memref<512x1xf32, #tpu.memory_space<vmem>>, %arg4: memref<128x512xbf16, #tpu.memory_space<vmem>>, %arg5: memref<128x1xf32, #tpu.memory_space<vmem>>, %arg6: memref<32x128xbf16, #tpu.memory_space<vmem>>, %arg7: memref<32x1xf32, #tpu.memory_space<vmem>>, %arg8: memref<16x32xbf16, #tpu.memory_space<vmem>>, %arg9: memref<16x1xf32, #tpu.memory_space<vmem>>, %arg10: memref<16x1xf32, #tpu.memory_space<vmem>>, %arg11: memref<1x1xf32, #tpu.memory_space<vmem>>, %arg12: memref<1x128xf32, #tpu.memory_space<vmem>>) attributes {dimension_semantics = [#tpu.dimension_semantics<parallel>], iteration_bounds = array<i64: 2>, scalar_prefetch = 0 : i64, scratch_operands = 0 : i64, tpu.core_type = #tpu.core_type<tc>, window_params = [{transform_indices = @transform_0, window_bounds = array<i64: 5, 128>}, {pipeline_mode = #tpu.pipeline_mode<synchronous>, transform_indices = @transform_1, window_bounds = array<i64: 512, 5>}, {pipeline_mode = #tpu.pipeline_mode<synchronous>, transform_indices = @transform_2, window_bounds = array<i64: 512, 1>}, {pipeline_mode = #tpu.pipeline_mode<synchronous>, transform_indices = @transform_3, window_bounds = array<i64: 128, 512>}, {pipeline_mode = #tpu.pipeline_mode<synchronous>, transform_indices = @transform_4, window_bounds = array<i64: 128, 1>}, {pipeline_mode = #tpu.pipeline_mode<synchronous>, transform_indices = @transform_5, window_bounds = array<i64: 32, 128>}, {pipeline_mode = #tpu.pipeline_mode<synchronous>, transform_indices = @transform_6, window_bounds = array<i64: 32, 1>}, {pipeline_mode = #tpu.pipeline_mode<synchronous>, transform_indices = @transform_7, window_bounds = array<i64: 16, 32>}, {pipeline_mode = #tpu.pipeline_mode<synchronous>, transform_indices = @transform_8, window_bounds = array<i64: 16, 1>}, {pipeline_mode = #tpu.pipeline_mode<synchronous>, transform_indices = @transform_9, window_bounds = array<i64: 16, 1>}, {pipeline_mode = #tpu.pipeline_mode<synchronous>, transform_indices = @transform_10, window_bounds = array<i64: 1, 1>}, {transform_indices = @transform_11, window_bounds = array<i64: 1, 128>}]} {
    %c0 = arith.constant 0 : index
    %c0_0 = arith.constant 0 : index
    %0 = vector.load %arg1[%c0, %c0_0] : memref<5x128xf32, #tpu.memory_space<vmem>>, vector<5x128xf32>
    %1 = arith.truncf %0 : vector<5x128xf32> to vector<5x128xbf16>
    %c0_1 = arith.constant 0 : index
    %c0_2 = arith.constant 0 : index
    %2 = vector.load %arg2[%c0_1, %c0_2] : memref<512x5xbf16, #tpu.memory_space<vmem>>, vector<512x5xbf16>
    %cst = arith.constant dense<0.000000e+00> : vector<512x128xf32>
    %3 = tpu.matmul %2, %1, %cst {dimension_numbers = #tpu.dot_dimension_numbers<[1], [0], [0], [1], [0, 0, 1, 1], [], []>} : vector<512x5xbf16>, vector<5x128xbf16>, vector<512x128xf32> -> vector<512x128xf32>
    %c0_3 = arith.constant 0 : index
    %c0_4 = arith.constant 0 : index
    %4 = vector.load %arg3[%c0_3, %c0_4] : memref<512x1xf32, #tpu.memory_space<vmem>>, vector<512x1xf32>
    %5 = vector.broadcast %4 : vector<512x1xf32> to vector<512x128xf32>
    %6 = arith.addf %3, %5 : vector<512x128xf32>
    %cst_5 = arith.constant 0.000000e+00 : f32
    %7 = vector.broadcast %cst_5 : f32 to vector<512x128xf32>
    %8 = arith.maximumf %6, %7 : vector<512x128xf32>
    %c0_6 = arith.constant 0 : index
    %c0_7 = arith.constant 0 : index
    %9 = vector.load %arg4[%c0_6, %c0_7] : memref<128x512xbf16, #tpu.memory_space<vmem>>, vector<128x512xbf16>
    %10 = arith.truncf %8 : vector<512x128xf32> to vector<512x128xbf16>
    %cst_8 = arith.constant dense<0.000000e+00> : vector<128x128xf32>
    %11 = tpu.matmul %9, %10, %cst_8 {dimension_numbers = #tpu.dot_dimension_numbers<[1], [0], [0], [1], [0, 0, 1, 1], [], []>} : vector<128x512xbf16>, vector<512x128xbf16>, vector<128x128xf32> -> vector<128x128xf32>
    %c0_9 = arith.constant 0 : index
    %c0_10 = arith.constant 0 : index
    %12 = vector.load %arg5[%c0_9, %c0_10] : memref<128x1xf32, #tpu.memory_space<vmem>>, vector<128x1xf32>
    %13 = vector.broadcast %12 : vector<128x1xf32> to vector<128x128xf32>
    %14 = arith.addf %11, %13 : vector<128x128xf32>
    %cst_11 = arith.constant 0.000000e+00 : f32
    %15 = vector.broadcast %cst_11 : f32 to vector<128x128xf32>
    %16 = arith.maximumf %14, %15 : vector<128x128xf32>
    %c0_12 = arith.constant 0 : index
    %c0_13 = arith.constant 0 : index
    %17 = vector.load %arg6[%c0_12, %c0_13] : memref<32x128xbf16, #tpu.memory_space<vmem>>, vector<32x128xbf16>
    %18 = arith.truncf %16 : vector<128x128xf32> to vector<128x128xbf16>
    %cst_14 = arith.constant dense<0.000000e+00> : vector<32x128xf32>
    %19 = tpu.matmul %17, %18, %cst_14 {dimension_numbers = #tpu.dot_dimension_numbers<[1], [0], [0], [1], [0, 0, 1, 1], [], []>} : vector<32x128xbf16>, vector<128x128xbf16>, vector<32x128xf32> -> vector<32x128xf32>
    %c0_15 = arith.constant 0 : index
    %c0_16 = arith.constant 0 : index
    %20 = vector.load %arg7[%c0_15, %c0_16] : memref<32x1xf32, #tpu.memory_space<vmem>>, vector<32x1xf32>
    %21 = vector.broadcast %20 : vector<32x1xf32> to vector<32x128xf32>
    %22 = arith.addf %19, %21 : vector<32x128xf32>
    %cst_17 = arith.constant 0.000000e+00 : f32
    %23 = vector.broadcast %cst_17 : f32 to vector<32x128xf32>
    %24 = arith.maximumf %22, %23 : vector<32x128xf32>
    %c0_18 = arith.constant 0 : index
    %c0_19 = arith.constant 0 : index
    %25 = vector.load %arg8[%c0_18, %c0_19] : memref<16x32xbf16, #tpu.memory_space<vmem>>, vector<16x32xbf16>
    %26 = arith.truncf %24 : vector<32x128xf32> to vector<32x128xbf16>
    %cst_20 = arith.constant dense<0.000000e+00> : vector<16x128xf32>
    %27 = tpu.matmul %25, %26, %cst_20 {dimension_numbers = #tpu.dot_dimension_numbers<[1], [0], [0], [1], [0, 0, 1, 1], [], []>} : vector<16x32xbf16>, vector<32x128xbf16>, vector<16x128xf32> -> vector<16x128xf32>
    %c0_21 = arith.constant 0 : index
    %c0_22 = arith.constant 0 : index
    %28 = vector.load %arg9[%c0_21, %c0_22] : memref<16x1xf32, #tpu.memory_space<vmem>>, vector<16x1xf32>
    %29 = vector.broadcast %28 : vector<16x1xf32> to vector<16x128xf32>
    %30 = arith.addf %27, %29 : vector<16x128xf32>
    %cst_23 = arith.constant 0.000000e+00 : f32
    %31 = vector.broadcast %cst_23 : f32 to vector<16x128xf32>
    %32 = arith.maximumf %30, %31 : vector<16x128xf32>
    %c0_24 = arith.constant 0 : index
    %c0_25 = arith.constant 0 : index
    %33 = vector.load %arg10[%c0_24, %c0_25] : memref<16x1xf32, #tpu.memory_space<vmem>>, vector<16x1xf32>
    %34 = vector.broadcast %33 : vector<16x1xf32> to vector<16x128xf32>
    %35 = arith.mulf %32, %34 : vector<16x128xf32>
    %cst_26 = arith.constant dense<0.000000e+00> : vector<128xf32>
    %36 = vector.multi_reduction <add>, %35, %cst_26 [0] : vector<16x128xf32> to vector<128xf32>
    %37 = vector.shape_cast %36 : vector<128xf32> to vector<1x128xf32>
    %c0_27 = arith.constant 0 : index
    %c0_28 = arith.constant 0 : index
    %38 = vector.load %arg11[%c0_27, %c0_28] : memref<1x1xf32, #tpu.memory_space<vmem>>, vector<1x1xf32>
    %39 = vector.broadcast %38 : vector<1x1xf32> to vector<1x128xf32>
    %40 = arith.addf %37, %39 : vector<1x128xf32>
    %cst_29 = arith.constant -8.000000e+01 : f32
    %41 = vector.broadcast %cst_29 : f32 to vector<1x128xf32>
    %42 = arith.maximumf %40, %41 : vector<1x128xf32>
    %cst_30 = arith.constant 0.000000e+00 : f32
    %43 = vector.broadcast %cst_30 : f32 to vector<1x128xf32>
    %44 = arith.subf %43, %42 : vector<1x128xf32>
    %45 = math.exp %44 : vector<1x128xf32>
    %cst_31 = arith.constant 1.000000e+00 : f32
    %46 = vector.broadcast %cst_31 : f32 to vector<1x128xf32>
    %47 = arith.addf %46, %45 : vector<1x128xf32>
    %48 = tpu.reciprocal %47 {approx = true} : vector<1x128xf32> -> vector<1x128xf32>
    %c0_32 = arith.constant 0 : index
    %c0_33 = arith.constant 0 : index
    %49 = vector.load %arg12[%c0_32, %c0_33] : memref<1x128xf32, #tpu.memory_space<vmem>>, vector<1x128xf32>
    tpu.vector_store %arg12[%c0_32, %c0_33], %48 {strides = array<i32>} : memref<1x128xf32, #tpu.memory_space<vmem>>, vector<1x128xf32>,
    return
  }
  func.func @transform_0(%arg0: i32) -> (i32, i32) {
    %c0_i32 = arith.constant 0 : i32
    %c0_i32_0 = arith.constant 0 : i32
    return %c0_i32, %arg0 : i32, i32
  }
  func.func @transform_1(%arg0: i32) -> (i32, i32) {
    %c0_i32 = arith.constant 0 : i32
    %c0_i32_0 = arith.constant 0 : i32
    %c0_i32_1 = arith.constant 0 : i32
    return %c0_i32, %c0_i32_0 : i32, i32
  }
  func.func @transform_2(%arg0: i32) -> (i32, i32) {
    %c0_i32 = arith.constant 0 : i32
    %c0_i32_0 = arith.constant 0 : i32
    %c0_i32_1 = arith.constant 0 : i32
    return %c0_i32, %c0_i32_0 : i32, i32
  }
  func.func @transform_3(%arg0: i32) -> (i32, i32) {
    %c0_i32 = arith.constant 0 : i32
    %c0_i32_0 = arith.constant 0 : i32
    %c0_i32_1 = arith.constant 0 : i32
    return %c0_i32, %c0_i32_0 : i32, i32
  }
  func.func @transform_4(%arg0: i32) -> (i32, i32) {
    %c0_i32 = arith.constant 0 : i32
    %c0_i32_0 = arith.constant 0 : i32
    %c0_i32_1 = arith.constant 0 : i32
    return %c0_i32, %c0_i32_0 : i32, i32
  }
  func.func @transform_5(%arg0: i32) -> (i32, i32) {
    %c0_i32 = arith.constant 0 : i32
    %c0_i32_0 = arith.constant 0 : i32
    %c0_i32_1 = arith.constant 0 : i32
    return %c0_i32, %c0_i32_0 : i32, i32
  }
  func.func @transform_6(%arg0: i32) -> (i32, i32) {
    %c0_i32 = arith.constant 0 : i32
    %c0_i32_0 = arith.constant 0 : i32
    %c0_i32_1 = arith.constant 0 : i32
    return %c0_i32, %c0_i32_0 : i32, i32
  }
  func.func @transform_7(%arg0: i32) -> (i32, i32) {
    %c0_i32 = arith.constant 0 : i32
    %c0_i32_0 = arith.constant 0 : i32
    %c0_i32_1 = arith.constant 0 : i32
    return %c0_i32, %c0_i32_0 : i32, i32
  }
  func.func @transform_8(%arg0: i32) -> (i32, i32) {
    %c0_i32 = arith.constant 0 : i32
    %c0_i32_0 = arith.constant 0 : i32
    %c0_i32_1 = arith.constant 0 : i32
    return %c0_i32, %c0_i32_0 : i32, i32
  }
  func.func @transform_9(%arg0: i32) -> (i32, i32) {
    %c0_i32 = arith.constant 0 : i32
    %c0_i32_0 = arith.constant 0 : i32
    %c0_i32_1 = arith.constant 0 : i32
    return %c0_i32, %c0_i32_0 : i32, i32
  }
  func.func @transform_10(%arg0: i32) -> (i32, i32) {
    %c0_i32 = arith.constant 0 : i32
    %c0_i32_0 = arith.constant 0 : i32
    %c0_i32_1 = arith.constant 0 : i32
    return %c0_i32, %c0_i32_0 : i32, i32
  }
  func.func @transform_11(%arg0: i32) -> (i32, i32) {
    %c0_i32 = arith.constant 0 : i32
    %c0_i32_0 = arith.constant 0 : i32
    return %c0_i32, %arg0 : i32, i32
  }
}

</mosaic_0001>

<bundles_post_ra>
// kernel: tpu_custom_call.1
= control target key start
LH: loop header
LB: loop body
LE: loop exit
PB: predicated region body
PF: predicated region fallthrough
CT: control target
= control target key end

     0   :  { %s3722_s0 = inlined_call_operand.vmem [shape: f32[5,256], index: 0, kind: input, shape index: {}]   ;;  %s3723_s1 = inlined_call_operand.vmem [shape: bf16[512,5], index: 1, kind: input, shape index: {}]   ;;  %s3724_s2 = inlined_call_operand.vmem [shape: f32[512,1], index: 2, kind: input, shape index: {}]   ;;  %s3725_s3 = inlined_call_operand.vmem [shape: bf16[128,512], index: 3, kind: input, shape index: {}]   ;;  %s3726_s4 = inlined_call_operand.vmem [shape: f32[128,1], index: 4, kind: input, shape index: {}]   ;;  %s3727_s5 = inlined_call_operand.vmem [shape: bf16[32,128], index: 5, kind: input, shape index: {}]   ;;  %s3728_s6 = inlined_call_operand.vmem [shape: f32[32,1], index: 6, kind: input, shape index: {}]   ;;  %s3729_s7 = inlined_call_operand.vmem [shape: bf16[16,32], index: 7, kind: input, shape index: {}]   ;;  %s3730_s8 = inlined_call_operand.vmem [shape: f32[16,1], index: 8, kind: input, shape index: {}]   ;;  %s3731_s9 = inlined_call_operand.vmem [shape: f32[16,1], index: 9, kind: input, shape index: {}]   ;;  %s3732_s10 = inlined_call_operand.<no memory space> [shape: f32[1,1], index: 10, kind: input, shape index: {}]   ;;  %s3733_s11 = inlined_call_operand.hbm [shape: f32[1,256], index: 11, kind: output, shape index: {}]  }
   0x1   :  { %3734 = sst [smem:[#allocation6_spill]] %s3722_s0  ;;  %v16_v0 = vstv %s3732_s10 }
   0x2   :  { %17 = vst [vmem:[#allocation2] sm:$0x1] %v16_v0 }
   0x3   :  { %18 = vsyncpa [#allocation4], 0 }
   0x4   :  { %20 = vsyncpa [#allocation4 + $0x1], 0  ;;  %s2897_s19 = smov 0   ;;  %s2899_s20 = smov 0  }
   0x5   :  { %s2901_s21 = smov 0   ;;  %s2903_s22 = smov 0  }
   0x6 LB: > { %s2918_s10 = sadd.s32 4294967295, %s2827_s22   ;;  %s2257_s23 = sadd.s32 4294967294, %s2827_s22   ;;  %s2827_s22 = sphi %s2903_s22, %s3741_s22   ;;  %s2823_s21 = sphi %s2901_s21, %s3740_s21   ;;  %s2819_s20 = sphi %s2899_s20, %s3739_s20   ;;  %s2815_s19 = sphi %s2897_s19, %s3738_s19  }
   0x7   : > { %s2922_s24 = sadd.s32 1, %s2827_s22   ;;  %s269_s25 = sadd.s32 1, %s2823_s21 }
   0x8   : > { %s266_s26 = ssub.s32 %s2827_s22, %s2922_s24  ;;  %p279_p0 = scmp.ne.s32.totalorder %s2823_s21, %s2819_s20 }
   0x9   : > { %p267_p1 = scmp.eq.s32.totalorder %s266_s26, 0  ;;  %p280_p2 = scmp.eq.s32.totalorder %s2918_s10, 1 }
   0xa   : > { %p285_p3 = scmp.ne.s32.totalorder %s2819_s20, %s2815_s19  ;;  %p286_p4 = scmp.eq.s32.totalorder %s2257_s23, 1 }
   0xb   : > { %s2933_s27 = scalar_select %p267_p1, %s2823_s21, %s269_s25  }
   0xc   : > { %p2935_p5 = por %p280_p2, %p279_p0  ;;  %p2939_p6 = por %p286_p4, %p285_p3 }
   0xd   : > { %p2260_p7 = scmp.ge.s32.totalorder %s2827_s22, 1  ;;  %p341_p8 = scmp.lt.s32.totalorder %s2827_s22, 3 }
   0xf   : > { %p342_p9 = pnand %p2260_p7, %p341_p8 }
  0x10   : > { %v466_v1 = vld [vmem:[%s3724_s2 + $0x80] sm:$0xff] (!%p342_p9)  ;;  %p379_p10 = scmp.lt.s32.totalorder (!%p342_p9), %s2918_s10, 1  ;;  %vm1091_vm0 = vcmask (!%p342_p9), 1041408   ;;  %v2829_v3 = vmov (!%p342_p9), 0   ;;  %v467_v4 = vld [vmem:[%s3724_s2 + $0x88] sm:$0xff] (!%p342_p9)  ;;  %vm1092_vm1 = vcmask (!%p342_p9), 1042432  }
  0x11   : > { %345 = sbr.rel (%p342_p9) target bundleno = 1177 (0x499), region = 64  ;;  %v450_v2 = vld [vmem:[%s3724_s2] sm:$0xff] (!%p342_p9)  ;;  %2677 = vset.pattern.permute.xlu1 (!%p342_p9), %v2829_v3  ;;  %2676 = vset.pattern.permute.xlu0 (!%p342_p9), %v2829_v3  ;;  %v451_v5 = vld [vmem:[%s3724_s2 + $0x8] sm:$0xff] (!%p342_p9)  ;;  %v2830_v6 = vmov (!%p342_p9), 65535   ;;  %vm994_vm2 = vcmask (!%p342_p9), 39936   ;;  %v468_v9 = vld [vmem:[%s3724_s2 + $0x90] sm:$0xff] (!%p342_p9) }
  0x12   : > { %596 = vperm.xlu0 (!%p342_p9), %2676, %v466_v1   ;;  %516 = vperm.xlu1 (!%p342_p9), %2677, %v450_v2   ;;  %v1093_v7 = vsel (!%p342_p9), %vm1091_vm0, 4294967295, %v2830_v6  ;;  %v2678_v8 = vld [vmem:[%s3723_s1] sm:$0xff] (!%p342_p9)   ;;  %s3737_s0 = sld [smem:[#allocation6_spill]] (!%p342_p9)  ;;  %v469_v12 = vld [vmem:[%s3724_s2 + $0x98] sm:$0xff] (!%p342_p9)  ;;  %v452_v15 = vld [vmem:[%s3724_s2 + $0x10] sm:$0xff] (!%p342_p9)  ;;  %vm2832_vm3 = vmmov (!%p342_p9), 0  }
  0x13   : > { %v1094_v10 = vsel (!%p342_p9), %vm1092_vm1, %v1093_v7, 0  ;;  %2541 = vmatprep.mubr.msk.bf16.mxu0 (!%p342_p9), %vm994_vm2, %v2678_v8  ;;  %v453_v16 = vld [vmem:[%s3724_s2 + $0x18] sm:$0xff] (!%p342_p9)  ;;  %v2679_v17 = vld [vmem:[%s3723_s1 + $0x8] sm:$0xff] (!%p342_p9)   ;;  %v2680_v18 = vld [vmem:[%s3723_s1 + $0x10] sm:$0xff] (!%p342_p9)   ;;  %vm2103_vm4 = vcmask (!%p342_p9), 261120   ;;  %s377_s26 = sand.u32 (!%p342_p9), 1, %s2819_s20  }
  0x14   : > { %v470_v19 = vld [vmem:[%s3724_s2 + $0xa0] sm:$0xff] (!%p342_p9)  ;;  %v471_v20 = vld [vmem:[%s3724_s2 + $0xa8] sm:$0xff] (!%p342_p9)  ;;  %v2681_v23 = vld [vmem:[%s3723_s1 + $0x18] sm:$0xff] (!%p342_p9)   ;;  %s378_s12 = scalar_lea.vmem (!%p342_p9), [#allocation3], %s377_s26  ;;  %s2190_s17 = scalar_lea.sflag (!%p342_p9), [#allocation4], %s377_s26 }
  0x15   : > { %v454_v21 = vld [vmem:[%s3724_s2 + $0x20] sm:$0xff] (!%p342_p9)  ;;  %v455_v22 = vld [vmem:[%s3724_s2 + $0x28] sm:$0xff] (!%p342_p9)  ;;  %v472_v25 = vld [vmem:[%s3724_s2 + $0xb0] sm:$0xff] (!%p342_p9)  ;;  %s2202_s13 = sshll.u32 (!%p342_p9), %s378_s12, 4  ;;  %s3682_s13 = int_to_ptr.vmem [resolvable:$true] %s2202_s13 }
  0x16   : > { %601 = vperm.xlu0 (!%p342_p9), %2676, %v467_v4   ;;  %521 = vperm.xlu1 (!%p342_p9), %2677, %v451_v5   ;;  %v2682_v24 = vld [vmem:[%s3723_s1 + $0x20] sm:$0xff] (!%p342_p9)   ;;  %v473_v26 = vld [vmem:[%s3724_s2 + $0xb8] sm:$0xff] (!%p342_p9)  ;;  %v456_v27 = vld [vmem:[%s3724_s2 + $0x30] sm:$0xff] (!%p342_p9)  ;;  %s2765_s18 = scalar_lea.vmem (!%p342_p9), %s3682_s13, 16 }
  0x17   : > { %v457_v28 = vld [vmem:[%s3724_s2 + $0x38] sm:$0xff] (!%p342_p9)  ;;  %v2683_v29 = vld [vmem:[%s3723_s1 + $0x28] sm:$0xff] (!%p342_p9)   ;;  %v2684_v30 = vld [vmem:[%s3723_s1 + $0x30] sm:$0xff] (!%p342_p9)   ;;  %p2766_p11 = scmp.ne.s32.totalorder (!%p342_p9), %s3682_s13, %s2765_s18 }
  0x18   : > { %s380_s23 = scalar_select %p379_p10, %s2918_s10, 1  ;;  %v474_v31 = vld [vmem:[%s3724_s2 + $0xc0] sm:$0xff]  ;;  %v475_v32 = vld [vmem:[%s3724_s2 + $0xc8] sm:$0xff]  ;;  %v2685_v35 = vld [vmem:[%s3723_s1 + $0x38] sm:$0xff]  }
  0x19   : > { %v458_v33 = vld [vmem:[%s3724_s2 + $0x40] sm:$0xff]  ;;  %v459_v34 = vld [vmem:[%s3724_s2 + $0x48] sm:$0xff]  ;;  %v476_v37 = vld [vmem:[%s3724_s2 + $0xd0] sm:$0xff]  ;;  %p2767_p12 = pnand %p2766_p11, %p2935_p5 }
  0x1a   : > { %s2261_s30 = sshll.u32 %s380_s23, 3  ;;  %606 = vperm.xlu0 %2676, %v468_v9   ;;  %611 = vperm.xlu1 %2677, %v469_v12   ;;  %v2686_v36 = vld [vmem:[%s3723_s1 + $0x40] sm:$0xff]   ;;  %v477_v38 = vld [vmem:[%s3724_s2 + $0xd8] sm:$0xff]  ;;  %v460_v39 = vld [vmem:[%s3724_s2 + $0x50] sm:$0xff] }
  0x1b   : > { %s382_s16 = scalar_lea.vmem %s3737_s0, %s2261_s30  ;;  %v461_v40 = vld [vmem:[%s3724_s2 + $0x58] sm:$0xff]  ;;  %v2687_v41 = vld [vmem:[%s3723_s1 + $0x48] sm:$0xff]   ;;  %v2688_v42 = vld [vmem:[%s3723_s1 + $0x50] sm:$0xff]   ;;  %s2362_s30 = sshll.u32 %s2918_s10, 4 }
  0x1c   : > { %v384_v11 = vld [vmem:[%s382_s16] sm:$0x1f]  ;;  %v479_v44 = vld [vmem:[%s3724_s2 + $0xe8] sm:$0xff]  ;;  %v2689_v47 = vld [vmem:[%s3723_s1 + $0x58] sm:$0xff]   ;;  %s3680_s16 = scalar_lea.hbm %s3733_s11, %s2362_s30  ;;  %p2768_p13 = pneg %p2767_p12 }
  0x1d   : > { %v385_v13 = vpack.c.bf16 %v384_v11, %v384_v11  ;;  %v478_v43 = vld [vmem:[%s3724_s2 + $0xe0] sm:$0xff]  ;;  %v463_v46 = vld [vmem:[%s3724_s2 + $0x68] sm:$0xff]  ;;  %v480_v49 = vld [vmem:[%s3724_s2 + $0xf0] sm:$0xff]  ;;  %s2833_s10 = smov [#allocation3]  }
  0x1e   : > { %526 = vperm.xlu0 %2676, %v452_v15   ;;  %531 = vperm.xlu1 %2677, %v453_v16   ;;  %v462_v45 = vld [vmem:[%s3724_s2 + $0x60] sm:$0xff]  ;;  %v481_v50 = vld [vmem:[%s3724_s2 + $0xf8] sm:$0xff]  ;;  %v464_v51 = vld [vmem:[%s3724_s2 + $0x70] sm:$0xff]  ;;  %s2769_s23 = sshll.u32 %s2833_s10, 4  ;;  %s2770_s23 = int_to_ptr.vmem [resolvable:$false] %s2769_s23 }
  0x1f   : > { %v1096_v14 = vand.u32 %v1094_v10, %v385_v13  ;;  %v2690_v48 = vld [vmem:[%s3723_s1 + $0x60] sm:$0xff]   ;;  %v465_v52 = vld [vmem:[%s3724_s2 + $0x78] sm:$0xff]  ;;  %v2691_v53 = vld [vmem:[%s3723_s1 + $0x68] sm:$0xff]   ;;  %s2771_s0 = scalar_lea.vmem %s2770_s23, 32  ;;  %p2772_p0 = scmp.lt.s32.totalorder %s3682_s13, %s2770_s23 }
  0x20   : > { %v2692_v54 = vld [vmem:[%s3723_s1 + $0x70] sm:$0xff]   ;;  %v498_v55 = vld [vmem:[%s3724_s2 + $0x180] sm:$0xff]  ;;  %v499_v56 = vld [vmem:[%s3724_s2 + $0x188] sm:$0xff]  ;;  %p2773_p1 = scmp.lt.s32.totalorder %s2771_s0, %s2765_s18 }
  0x21   : > { %2539 = vmatprep.subr.bf16.mxu0 %v1096_v14  ;;  %v482_v57 = vld [vmem:[%s3724_s2 + $0x100] sm:$0xff]  ;;  %v483_v58 = vld [vmem:[%s3724_s2 + $0x108] sm:$0xff]  ;;  %v2693_v59 = vld [vmem:[%s3723_s1 + $0x78] sm:$0xff]  }
  0x22   : > { %2540 = vmatpush3.bf16.msra.mxu0 %v1096_v14  ;;  %616 = vperm.xlu0 %2676, %v470_v19   ;;  %v2694_v60 = vld [vmem:[%s3723_s1 + $0x80] sm:$0xff]   ;;  %v500_v61 = vld [vmem:[%s3724_s2 + $0x190] sm:$0xff]  ;;  %v501_v62 = vld [vmem:[%s3724_s2 + $0x198] sm:$0xff]  ;;  %p2774_p2 = por %p2773_p1, %p2772_p0 }
  0x23   : > { %621 = vperm.xlu1 %2677, %v471_v20   ;;  %v484_v63 = vld [vmem:[%s3724_s2 + $0x110] sm:$0xff]  ;;  %v485_v0 = vld [vmem:[%s3724_s2 + $0x118] sm:$0xff]  ;;  %v2695_v1 = vld [vmem:[%s3723_s1 + $0x88] sm:$0xff]  }
  0x24   : > { %v2696_v2 = vld [vmem:[%s3723_s1 + $0x90] sm:$0xff]   ;;  %v502_v3 = vld [vmem:[%s3724_s2 + $0x1a0] sm:$0xff]  ;;  %v503_v4 = vld [vmem:[%s3724_s2 + $0x1a8] sm:$0xff]  ;;  %p2775_p3 = pnand %p2774_p2, %p2768_p13 }
  0x25   : > { %2542 = vmatmul.mubr.msk.bf16.vlgmr.msra.gmra.mrb[0].mxu0 %vm994_vm2, %v2679_v17  ;;  %v486_v5 = vld [vmem:[%s3724_s2 + $0x120] sm:$0xff]  ;;  %v487_v6 = vld [vmem:[%s3724_s2 + $0x128] sm:$0xff]  ;;  %v2697_v7 = vld [vmem:[%s3723_s1 + $0x98] sm:$0xff]  }
  0x26   : > { %2545 = vmatprep.mubr.msk.bf16.mxu0 %vm994_vm2, %v2680_v18  ;;  %536 = vperm.xlu0 %2676, %v454_v21   ;;  %v2698_v8 = vld [vmem:[%s3723_s1 + $0xa0] sm:$0xff]   ;;  %v504_v9 = vld [vmem:[%s3724_s2 + $0x1b0] sm:$0xff]  ;;  %v505_v10 = vld [vmem:[%s3724_s2 + $0x1b8] sm:$0xff] }
  0x27   : > { %541 = vperm.xlu1 %2677, %v455_v22   ;;  %v488_v11 = vld [vmem:[%s3724_s2 + $0x130] sm:$0xff]  ;;  %v489_v12 = vld [vmem:[%s3724_s2 + $0x138] sm:$0xff]  ;;  %v2699_v13 = vld [vmem:[%s3723_s1 + $0xa8] sm:$0xff]  }
  0x28   : > { %v2700_v14 = vld [vmem:[%s3723_s1 + $0xb0] sm:$0xff]   ;;  %v506_v15 = vld [vmem:[%s3724_s2 + $0x1c0] sm:$0xff]  ;;  %v507_v16 = vld [vmem:[%s3724_s2 + $0x1c8] sm:$0xff] }
  0x29   : > { %v490_v17 = vld [vmem:[%s3724_s2 + $0x140] sm:$0xff]  ;;  %v491_v18 = vld [vmem:[%s3724_s2 + $0x148] sm:$0xff]  ;;  %v2701_v19 = vld [vmem:[%s3723_s1 + $0xb8] sm:$0xff]  }
  0x2a   : > { %626 = vperm.xlu0 %2676, %v472_v25   ;;  %v2702_v20 = vld [vmem:[%s3723_s1 + $0xc0] sm:$0xff]   ;;  %v508_v21 = vld [vmem:[%s3724_s2 + $0x1d0] sm:$0xff]  ;;  %v509_v22 = vld [vmem:[%s3724_s2 + $0x1d8] sm:$0xff] }
  0x2b   : > { %631 = vperm.xlu1 %2677, %v473_v26   ;;  %v2703_v25 = vld [vmem:[%s3723_s1 + $0xc8] sm:$0xff]   ;;  %v2704_v26 = vld [vmem:[%s3723_s1 + $0xd0] sm:$0xff]  }
  0x2d   : > { %2546 = vmatmul.mubr.msk.bf16.gmra.mrb[4].mxu0 %vm994_vm2, %v2681_v23  ;;  %v492_v23 = vld [vmem:[%s3724_s2 + $0x150] sm:$0xff] }
  0x2e   : > { %2549 = vmatprep.mubr.msk.bf16.mxu0 %vm994_vm2, %v2682_v24  ;;  %546 = vperm.xlu0 %2676, %v456_v27   ;;  %v493_v24 = vld [vmem:[%s3724_s2 + $0x158] sm:$0xff]  ;;  %v510_v27 = vld [vmem:[%s3724_s2 + $0x1e0] sm:$0xff] }
  0x2f   : > { %551 = vperm.xlu1 %2677, %v457_v28   ;;  %v511_v28 = vld [vmem:[%s3724_s2 + $0x1e8] sm:$0xff] }
  0x32   : > { %636 = vperm.xlu0 %2676, %v474_v31   ;;  %v2705_v31 = vld [vmem:[%s3723_s1 + $0xd8] sm:$0xff]  }
  0x33   : > { %641 = vperm.xlu1 %2677, %v475_v32   ;;  %v2706_v32 = vld [vmem:[%s3723_s1 + $0xe0] sm:$0xff]  }
  0x35   : > { %2550 = vmatmul.mubr.msk.bf16.gmra.mrb[8].mxu0 %vm994_vm2, %v2683_v29  ;;  %v494_v29 = vld [vmem:[%s3724_s2 + $0x160] sm:$0xff] }
  0x36   : > { %2553 = vmatprep.mubr.msk.bf16.mxu0 %vm994_vm2, %v2684_v30  ;;  %556 = vperm.xlu0 %2676, %v458_v33   ;;  %v495_v30 = vld [vmem:[%s3724_s2 + $0x168] sm:$0xff]  ;;  %v512_v33 = vld [vmem:[%s3724_s2 + $0x1f0] sm:$0xff] }
  0x37   : > { %561 = vperm.xlu1 %2677, %v459_v34   ;;  %v513_v34 = vld [vmem:[%s3724_s2 + $0x1f8] sm:$0xff] }
  0x3a   : > { %646 = vperm.xlu0 %2676, %v476_v37   ;;  %v2707_v37 = vld [vmem:[%s3723_s1 + $0xe8] sm:$0xff]  }
  0x3b   : > { %651 = vperm.xlu1 %2677, %v477_v38   ;;  %v2708_v38 = vld [vmem:[%s3723_s1 + $0xf0] sm:$0xff]  }
  0x3d   : > { %2554 = vmatmul.mubr.msk.bf16.gmra.mrb[12].mxu0 %vm994_vm2, %v2685_v35  ;;  %v496_v35 = vld [vmem:[%s3724_s2 + $0x170] sm:$0xff] }
  0x3e   : > { %2557 = vmatprep.mubr.msk.bf16.mxu0 %vm994_vm2, %v2686_v36  ;;  %566 = vperm.xlu0 %2676, %v460_v39   ;;  %v497_v36 = vld [vmem:[%s3724_s2 + $0x178] sm:$0xff]  ;;  %v1515_v39 = vld [vmem:[%s3726_s4] sm:$0xff] }
  0x3f   : > { %571 = vperm.xlu1 %2677, %v461_v40   ;;  %v1516_v40 = vld [vmem:[%s3726_s4 + $0x8] sm:$0xff] }
  0x42   : > { %656 = vperm.xlu0 %2676, %v478_v43   ;;  %v1517_v43 = vld [vmem:[%s3726_s4 + $0x10] sm:$0xff] }
  0x43   : > { %661 = vperm.xlu1 %2677, %v479_v44   ;;  %v1518_v44 = vld [vmem:[%s3726_s4 + $0x18] sm:$0xff] }
  0x45   : > { %2558 = vmatmul.mubr.msk.bf16.gmra.mrb[16].mxu0 %vm994_vm2, %v2687_v41 }
  0x46   : > { %2561 = vmatprep.mubr.msk.bf16.mxu0 %vm994_vm2, %v2688_v42  ;;  %576 = vperm.xlu0 %2676, %v462_v45   ;;  %v2709_v45 = vld [vmem:[%s3723_s1 + $0xf8] sm:$0xff]  }
  0x47   : > { %581 = vperm.xlu1 %2677, %v463_v46  }
  0x4a   : > { %666 = vperm.xlu0 %2676, %v480_v49  }
  0x4b   : > { %671 = vperm.xlu1 %2677, %v481_v50   ;;  %v1521_v50 = vld [vmem:[%s3726_s4 + $0x30] sm:$0xff] }
  0x4d   : > { %2562 = vmatmul.mubr.msk.bf16.gmra.mrb[20].mxu0 %vm994_vm2, %v2689_v47  ;;  %v1519_v47 = vld [vmem:[%s3726_s4 + $0x20] sm:$0xff] }
  0x4e   : > { %2565 = vmatprep.mubr.msk.bf16.mxu0 %vm994_vm2, %v2690_v48  ;;  %586 = vperm.xlu0 %2676, %v464_v51   ;;  %v1520_v48 = vld [vmem:[%s3726_s4 + $0x28] sm:$0xff]  ;;  %v1522_v51 = vld [vmem:[%s3726_s4 + $0x38] sm:$0xff] }
  0x4f   : > { %591 = vperm.xlu1 %2677, %v465_v52  }
  0x52   : > { %756 = vperm.xlu0 %2676, %v498_v55   ;;  %v1524_v55 = vld [vmem:[%s3726_s4 + $0x48] sm:$0xff] }
  0x53   : > { %761 = vperm.xlu1 %2677, %v499_v56  }
  0x55   : > { %2566 = vmatmul.mubr.msk.bf16.gmra.mrb[24].mxu0 %vm994_vm2, %v2691_v53 }
  0x56   : > { %2569 = vmatprep.mubr.msk.bf16.mxu0 %vm994_vm2, %v2692_v54  ;;  %676 = vperm.xlu0 %2676, %v482_v57   ;;  %v1523_v54 = vld [vmem:[%s3726_s4 + $0x40] sm:$0xff]  ;;  %v1525_v57 = vld [vmem:[%s3726_s4 + $0x50] sm:$0xff] }
  0x57   : > { %681 = vperm.xlu1 %2677, %v483_v58   ;;  %v1526_v58 = vld [vmem:[%s3726_s4 + $0x58] sm:$0xff] }
  0x5a   : > { %766 = vperm.xlu0 %2676, %v500_v61   ;;  %v1528_v61 = vld [vmem:[%s3726_s4 + $0x68] sm:$0xff] }
  0x5b   : > { %771 = vperm.xlu1 %2677, %v501_v62  }
  0x5d   : > { %2570 = vmatmul.mubr.msk.bf16.gmra.mrb[28].mxu0 %vm994_vm2, %v2693_v59 }
  0x5e   : > { %2573 = vmatprep.mubr.msk.bf16.mxu0 %vm994_vm2, %v2694_v60  ;;  %686 = vperm.xlu0 %2676, %v484_v63   ;;  %v1527_v60 = vld [vmem:[%s3726_s4 + $0x60] sm:$0xff] }
  0x5f   : > { %691 = vperm.xlu1 %2677, %v485_v0   ;;  %v1529_v0 = vld [vmem:[%s3726_s4 + $0x70] sm:$0xff] }
  0x62   : > { %776 = vperm.xlu0 %2676, %v502_v3   ;;  %v1993_v3 = vld [vmem:[%s3728_s6] sm:$0xff] }
  0x63   : > { %781 = vperm.xlu1 %2677, %v503_v4   ;;  %v1994_v4 = vld [vmem:[%s3728_s6 + $0x8] sm:$0xff] }
  0x65   : > { %2574 = vmatmul.mubr.msk.bf16.gmra.mrb[32].mxu0 %vm994_vm2, %v2695_v1  ;;  %v1530_v1 = vld [vmem:[%s3726_s4 + $0x78] sm:$0xff] }
  0x66   : > { %2577 = vmatprep.mubr.msk.bf16.mxu0 %vm994_vm2, %v2696_v2  ;;  %696 = vperm.xlu0 %2676, %v486_v5  }
  0x67   : > { %701 = vperm.xlu1 %2677, %v487_v6   ;;  %v1995_v6 = vld [vmem:[%s3728_s6 + $0x10] sm:$0xff] }
  0x6a   : > { %786 = vperm.xlu0 %2676, %v504_v9  }
  0x6b   : > { %791 = vperm.xlu1 %2677, %v505_v10   ;;  %v2086_v10 = vld [vmem:[%s3730_s8] sm:$0xff] }
  0x6d   : > { %2578 = vmatmul.mubr.msk.bf16.gmra.mrb[36].mxu0 %vm994_vm2, %v2697_v7  ;;  %v1996_v7 = vld [vmem:[%s3728_s6 + $0x18] sm:$0xff] }
  0x6e   : > { %2581 = vmatprep.mubr.msk.bf16.mxu0 %vm994_vm2, %v2698_v8  ;;  %706 = vperm.xlu0 %2676, %v488_v11   ;;  %v2087_v11 = vld [vmem:[%s3730_s8 + $0x8] sm:$0xff] }
  0x6f   : > { %711 = vperm.xlu1 %2677, %v489_v12  }
  0x72   : > { %796 = vperm.xlu0 %2676, %v506_v15   ;;  %v2151_v15 = vld [vmem:[%s3731_s9 + $0x8] sm:$0xff] }
  0x73   : > { %801 = vperm.xlu1 %2677, %v507_v16  }
  0x75   : > { %2582 = vmatmul.mubr.msk.bf16.gmra.mrb[40].mxu0 %vm994_vm2, %v2699_v13  ;;  %v2712_v13 = vld [vmem:[%s3725_s3 + $0x4] ss:$16 sps:$4 sm:$0xff]  }
  0x76   : > { %2585 = vmatprep.mubr.msk.bf16.mxu0 %vm994_vm2, %v2700_v14  ;;  %716 = vperm.xlu0 %2676, %v490_v17   ;;  %v2150_v14 = vld [vmem:[%s3731_s9] sm:$0xff] }
  0x77   : > { %721 = vperm.xlu1 %2677, %v491_v18   ;;  %1803 = vmatprep.mubr.bf16.mxu1 %v2712_v13  ;;  %v2171_v17 = vld [vmem:[#allocation2] sm:$0x1] }
  0x7a   : > { %806 = vperm.xlu0 %2676, %v508_v21  }
  0x7b   : > { %811 = vperm.xlu1 %2677, %v509_v22  }
  0x7d   : > { %2586 = vmatmul.mubr.msk.bf16.gmra.mrb[44].mxu0 %vm994_vm2, %v2701_v19 }
  0x7e   : > { %2589 = vmatprep.mubr.msk.bf16.mxu0 %vm994_vm2, %v2702_v20  ;;  %726 = vperm.xlu0 %2676, %v492_v23  }
  0x7f   : > { %731 = vperm.xlu1 %2677, %v493_v24  }
  0x82   : > { %816 = vperm.xlu0 %2676, %v510_v27  }
  0x83   : > { %821 = vperm.xlu1 %2677, %v511_v28  }
  0x85   : > { %2590 = vmatmul.mubr.msk.bf16.gmra.mrb[48].mxu0 %vm994_vm2, %v2703_v25 }
  0x86   : > { %2593 = vmatprep.mubr.msk.bf16.mxu0 %vm994_vm2, %v2704_v26  ;;  %736 = vperm.xlu0 %2676, %v494_v29  }
  0x87   : > { %741 = vperm.xlu1 %2677, %v495_v30  }
  0x8a   : > { %826 = vperm.xlu0 %2676, %v512_v33  }
  0x8b   : > { %831 = vperm.xlu1 %2677, %v513_v34  }
  0x8d   : > { %2594 = vmatmul.mubr.msk.bf16.gmra.mrb[52].mxu0 %vm994_vm2, %v2705_v31 }
  0x8e   : > { %2597 = vmatprep.mubr.msk.bf16.mxu0 %vm994_vm2, %v2706_v32  ;;  %746 = vperm.xlu0 %2676, %v496_v35  }
  0x8f   : > { %751 = vperm.xlu1 %2677, %v497_v36  }
  0x91   : > { %v3272_v41 = vpop.permute.xlu0 %596  ;;  %v3274_v42 = vpop.permute.xlu1 %516 }
  0x92   : > { %1533 = vperm.xlu0 %2676, %v1515_v39  }
  0x93   : > { %1538 = vperm.xlu1 %2677, %v1516_v40  }
  0x95   : > { %2598 = vmatmul.mubr.msk.bf16.gmra.mrb[56].mxu0 %vm994_vm2, %v2707_v37  ;;  %v3285_v46 = vpop.permute.xlu0 %601  ;;  %v3294_v49 = vpop.permute.xlu1 %521 }
  0x96   : > { %2601 = vmatprep.mubr.msk.bf16.mxu0 %vm994_vm2, %v2708_v38  ;;  %1543 = vperm.xlu0 %2676, %v1517_v43  }
  0x97   : > { %1548 = vperm.xlu1 %2677, %v1518_v44  }
  0x99   : > { %v3302_v52 = vpop.permute.xlu0 %606  ;;  %v3304_v53 = vpop.permute.xlu1 %611 }
  0x9a   : > { %1553 = vperm.xlu0 %2676, %v1519_v47  }
  0x9b   : > { %1558 = vperm.xlu1 %2677, %v1520_v48  }
  0x9d   : > { %2602 = vmatmul.mubr.msk.bf16.gmra.mrb[60].mxu0 %vm994_vm2, %v2709_v45  ;;  %v3312_v56 = vpop.permute.xlu0 %526  ;;  %v532_v59 = vpop.permute.xlu1 %531 }
  0x9e   : > { %1563 = vperm.xlu0 %2676, %v1521_v50  }
  0x9f   : > { %1568 = vperm.xlu1 %2677, %v1522_v51  }
  0xa1   : > { %v3326_v62 = vpop.permute.xlu0 %616 }
  0xa2   : > { %1573 = vperm.xlu0 %2676, %v1523_v54   ;;  %v3328_v63 = vpop.permute.xlu1 %621 }
  0xa3   : > { %1578 = vperm.xlu1 %2677, %v1524_v55  }
  0xa5   : > { %v3336_v2 = vpop.permute.xlu0 %536 }
  0xa6   : > { %1583 = vperm.xlu0 %2676, %v1525_v57   ;;  %v3344_v5 = vpop.permute.xlu1 %541 }
  0xa7   : > { %1588 = vperm.xlu1 %2677, %v1526_v58  }
  0xa9   : > { %v3352_v8 = vpop.permute.xlu0 %626 }
  0xaa   : > { %1593 = vperm.xlu0 %2676, %v1527_v60   ;;  %v3354_v9 = vpop.permute.xlu1 %631 }
  0xab   : > { %1598 = vperm.xlu1 %2677, %v1528_v61  }
  0xad   : > { %v547_v12 = vpop.permute.xlu0 %546 }
  0xae   : > { %1603 = vperm.xlu0 %2676, %v1529_v0   ;;  %v552_v16 = vpop.permute.xlu1 %551 }
  0xaf   : > { %1608 = vperm.xlu1 %2677, %v1530_v1  }
  0xb1   : > { %v3371_v18 = vpop.permute.xlu0 %636 }
  0xb2   : > { %1999 = vperm.xlu0 %2676, %v1993_v3   ;;  %v3373_v19 = vpop.permute.xlu1 %641 }
  0xb3   : > { %2004 = vperm.xlu1 %2677, %v1994_v4  }
  0xb5   : > { %v557_v20 = vpop.permute.xlu0 %556 }
  0xb6   : > { %2009 = vperm.xlu0 %2676, %v1995_v6   ;;  %v562_v21 = vpop.permute.xlu1 %561 }
  0xb7   : > { %2014 = vperm.xlu1 %2677, %v1996_v7  }
  0xb9   : > { %v3375_v22 = vpop.permute.xlu0 %646 }
  0xba   : > { %2090 = vperm.xlu0 %2676, %v2086_v10   ;;  %v3377_v23 = vpop.permute.xlu1 %651 }
  0xbb   : > { %2095 = vperm.xlu1 %2677, %v2087_v11  }
  0xbd   : > { %v567_v24 = vpop.permute.xlu0 %566 }
  0xbe   : > { %2154 = vperm.xlu0 %2676, %v2150_v14   ;;  %v572_v25 = vpop.permute.xlu1 %571 }
  0xbf   : > { %2159 = vperm.xlu1 %2677, %v2151_v15  }
  0xc1   : > { %v3379_v26 = vpop.permute.xlu0 %656 }
  0xc2   : > { %2174 = vperm.xlu0 %2676, %v2171_v17   ;;  %v3381_v27 = vpop.permute.xlu1 %661 }
  0xc5   : > { %v577_v28 = vpop.permute.xlu0 %576 }
  0xc6   : > { %v3383_v29 = vpop.permute.xlu1 %581 }
  0xc9   : > { %v3385_v30 = vpop.permute.xlu0 %666 }
  0xca   : > { %v3387_v31 = vpop.permute.xlu1 %671 }
  0xcd   : > { %v587_v32 = vpop.permute.xlu0 %586 }
  0xce   : > { %v592_v33 = vpop.permute.xlu1 %591 }
  0xd1   : > { %v3389_v34 = vpop.permute.xlu0 %756 }
  0xd2   : > { %v3391_v35 = vpop.permute.xlu1 %761 }
  0xd5   : > { %v3395_v44 = vpop.permute.xlu0 %676 }
  0xd6   : > { %v3398_v51 = vpop.permute.xlu1 %681 }
  0xda   : > { %v3407_v3 = vpop.permute.xlu1 %771 }
  0xf8   : > { %v2543_v36 = vpop.f32.mrb[0].mxu0 }
  0xf9   : > { %v1141_v37 = vadd.f32 %v2543_v36, %v3312_v56  ;;  %v1132_v38 = vpop.f32.mrb[1].mxu0 }
  0xfa   : > { %v2544_v39 = vpop.f32.mrb[2].mxu0  ;;  %v1133_v40 = vadd.f32 %v1132_v38, %v3274_v42  ;;  %v3404_v42 = vpop.permute.xlu0 %766 }
  0xfb   : > { %v1144_v43 = vadd.f32 %v2544_v39, %v532_v59  ;;  %v1135_v45 = vpop.f32.mrb[3].mxu0  ;;  %v1389_v47 = vmax.f32 %v1141_v37, 0.0 }
  0xfc   : > { %v1136_v50 = vadd.f32 %v1135_v45, %v3294_v49  ;;  %v1387_v54 = vmax.f32 %v1133_v40, 0.0 }
  0xfd   : > { %v1390_v48 = vmax.f32 %v1144_v43, 0.0 }
  0xfe   : > { %v1388_v57 = vmax.f32 %v1136_v50, 0.0  ;;  %v3412_v13 = vpop.permute.xlu0 %686 }
  0xff   : > { %v3400_v55 = vpack.c.bf16 %v1390_v48, %v1389_v47 }
 0x100   : > { %v2547_v58 = vpop.f32.mrb[4].mxu0  ;;  %v3402_v61 = vpack.c.bf16 %v1388_v57, %v1387_v54 }
 0x101   : > { %v1157_v56 = vadd.f32 %v2547_v58, %v547_v12  ;;  %v1148_v60 = vpop.f32.mrb[5].mxu0 }
 0x102   : > { %v2548_v59 = vpop.f32.mrb[6].mxu0  ;;  %v1149_v0 = vadd.f32 %v1148_v60, %v3336_v2  ;;  %v3416_v2 = vpop.permute.xlu1 %691 }
 0x103   : > { %v1160_v1 = vadd.f32 %v2548_v59, %v552_v16  ;;  %v1151_v49 = vpop.f32.mrb[7].mxu0  ;;  %v1393_v4 = vmax.f32 %v1157_v56, 0.0  ;;  %v3418_v45 = vpop.permute.xlu0 %776 }
 0x104   : > { %v1152_v7 = vadd.f32 %v1151_v49, %v3344_v5  ;;  %v1391_v10 = vmax.f32 %v1149_v0, 0.0 }
 0x105   : > { %v1394_v6 = vmax.f32 %v1160_v1, 0.0 }
 0x106   : > { %v1392_v12 = vmax.f32 %v1152_v7, 0.0  ;;  %v3422_v54 = vpop.permute.xlu1 %781 }
 0x107   : > { %v3410_v11 = vpack.c.bf16 %v1394_v6, %v1393_v4  ;;  %v3426_v59 = vpop.permute.xlu0 %696 }
 0x108   : > { %v2551_v14 = vpop.f32.mrb[8].mxu0  ;;  %v3414_v15 = vpack.c.bf16 %v1392_v12, %v1391_v10 }
 0x109   : > { %v1173_v17 = vadd.f32 %v2551_v14, %v567_v24  ;;  %v1164_v36 = vpop.f32.mrb[9].mxu0 }
 0x10a   : > { %v2552_v16 = vpop.f32.mrb[10].mxu0  ;;  %v1165_v37 = vadd.f32 %v1164_v36, %v557_v20  ;;  %v3429_v4 = vpop.permute.xlu1 %701 }
 0x10b   : > { %v1176_v38 = vadd.f32 %v2552_v16, %v572_v25  ;;  %v1167_v39 = vpop.f32.mrb[11].mxu0  ;;  %v1397_v40 = vmax.f32 %v1173_v17, 0.0 }
 0x10c   : > { %v1168_v5 = vadd.f32 %v1167_v39, %v562_v21  ;;  %v1395_v47 = vmax.f32 %v1165_v37, 0.0 }
 0x10d   : > { %v1398_v43 = vmax.f32 %v1176_v38, 0.0 }
 0x10e   : > { %v1396_v50 = vmax.f32 %v1168_v5, 0.0 }
 0x10f   : > { %v3420_v48 = vpack.c.bf16 %v1398_v43, %v1397_v40 }
 0x110   : > { %v2555_v57 = vpop.f32.mrb[12].mxu0  ;;  %v3424_v24 = vpack.c.bf16 %v1396_v50, %v1395_v47 }
 0x111   : > { %v1189_v58 = vadd.f32 %v2555_v57, %v587_v32  ;;  %v1180_v56 = vpop.f32.mrb[13].mxu0 }
 0x112   : > { %v2556_v60 = vpop.f32.mrb[14].mxu0  ;;  %v1181_v20 = vadd.f32 %v1180_v56, %v577_v28 }
 0x113   : > { %v1192_v25 = vadd.f32 %v2556_v60, %v592_v33  ;;  %v1183_v0 = vpop.f32.mrb[15].mxu0  ;;  %v1401_v21 = vmax.f32 %v1189_v58, 0.0  ;;  %v3436_v33 = vpop.permute.xlu0 %786 }
 0x114   : > { %v1184_v49 = vadd.f32 %v1183_v0, %v3383_v29  ;;  %v1399_v6 = vmax.f32 %v1181_v20, 0.0  ;;  %v3440_v29 = vpop.permute.xlu1 %791 }
 0x115   : > { %v1402_v1 = vmax.f32 %v1192_v25, 0.0 }
 0x116   : > { %v1400_v10 = vmax.f32 %v1184_v49, 0.0 }
 0x117   : > { %v3431_v7 = vpack.c.bf16 %v1402_v1, %v1401_v21  ;;  %v3443_v50 = vpop.permute.xlu0 %706 }
 0x118   : > { %v2559_v12 = vpop.f32.mrb[16].mxu0  ;;  %v3433_v14 = vpack.c.bf16 %v1400_v10, %v1399_v6 }
 0x119   : > { %v1205_v32 = vadd.f32 %v2559_v12, %v3302_v52  ;;  %v1196_v28 = vpop.f32.mrb[17].mxu0 }
 0x11a   : > { %v2560_v17 = vpop.f32.mrb[18].mxu0  ;;  %v1197_v36 = vadd.f32 %v1196_v28, %v3272_v41  ;;  %v3446_v41 = vpop.permute.xlu1 %711 }
 0x11b   : > { %v1208_v16 = vadd.f32 %v2560_v17, %v3304_v53  ;;  %v1199_v37 = vpop.f32.mrb[19].mxu0  ;;  %v1405_v38 = vmax.f32 %v1205_v32, 0.0  ;;  %v3452_v1 = vpop.permute.xlu0 %796 }
 0x11c   : > { %v1200_v40 = vadd.f32 %v1199_v37, %v3285_v46  ;;  %v1403_v43 = vmax.f32 %v1197_v36, 0.0 }
 0x11d   : > { %v1406_v39 = vmax.f32 %v1208_v16, 0.0 }
 0x11e   : > { %v1404_v47 = vmax.f32 %v1200_v40, 0.0  ;;  %v3454_v10 = vpop.permute.xlu1 %801 }
 0x11f   : > { %v1492_v5 = vpack.c.bf16 %v1406_v39, %v1405_v38  ;;  %v3460_v17 = vpop.permute.xlu0 %716 }
 0x120   : > { %v2563_v52 = vpop.f32.mrb[20].mxu0  ;;  %v1491_v56 = vpack.c.bf16 %v1404_v47, %v1403_v43 }
 0x121   : > { %v1221_v57 = vadd.f32 %v2563_v52, %v3352_v8  ;;  %v1212_v58 = vpop.f32.mrb[21].mxu0 }
 0x122   : > { %v2564_v53 = vpop.f32.mrb[22].mxu0  ;;  %v1213_v60 = vadd.f32 %v1212_v58, %v3326_v62  ;;  %2398 = vmatprep.subr.bf16.mxu1 %v1491_v56  ;;  %v3464_v38 = vpop.permute.xlu1 %721 }
 0x123   : > { %v1224_v20 = vadd.f32 %v2564_v53, %v3354_v9  ;;  %v1215_v25 = vpop.f32.mrb[23].mxu0  ;;  %2399 = vmatpush3.bf16.msra.mxu1 %v3402_v61  ;;  %v1409_v46 = vmax.f32 %v1221_v57, 0.0  ;;  %v3468_v47 = vpop.permute.xlu0 %806 }
 0x124   : > { %v1216_v21 = vadd.f32 %v1215_v25, %v3328_v63  ;;  %2400 = vmatprep.subr.bf16.mxu1 %v1492_v5  ;;  %v1407_v8 = vmax.f32 %v1213_v60, 0.0 }
 0x125   : > { %v1410_v0 = vmax.f32 %v1224_v20, 0.0 }
 0x126   : > { %v1408_v6 = vmax.f32 %v1216_v21, 0.0  ;;  %v3472_v57 = vpop.permute.xlu1 %811 }
 0x127   : > { %v1494_v49 = vpack.c.bf16 %v1410_v0, %v1409_v46  ;;  %2401 = vmatpush3.bf16.msra.mxu1 %v3400_v55  ;;  %v727_v25 = vpop.permute.xlu0 %726 }
 0x128   : > { %v2567_v62 = vpop.f32.mrb[24].mxu0  ;;  %v1493_v9 = vpack.c.bf16 %v1408_v6, %v1407_v8 }
 0x129   : > { %v1237_v12 = vadd.f32 %v2567_v62, %v3375_v22  ;;  %v1228_v32 = vpop.f32.mrb[25].mxu0 }
 0x12a   : > { %v2568_v61 = vpop.f32.mrb[26].mxu0  ;;  %v1229_v28 = vadd.f32 %v1228_v32, %v3371_v18  ;;  %2402 = vmatprep.subr.bf16.mxu1 %v1493_v9  ;;  %v732_v21 = vpop.permute.xlu1 %731 }
 0x12b   : > { %v1240_v63 = vadd.f32 %v2568_v61, %v3377_v23  ;;  %v1231_v36 = vpop.f32.mrb[27].mxu0  ;;  %2403 = vmatpush3.bf16.msra.mxu1 %v3414_v15  ;;  %v1413_v16 = vmax.f32 %v1237_v12, 0.0 }
 0x12c   : > { %v1232_v55 = vadd.f32 %v1231_v36, %v3373_v19  ;;  %2404 = vmatprep.subr.bf16.mxu1 %v1494_v49  ;;  %v1411_v22 = vmax.f32 %v1229_v28, 0.0 }
 0x12d   : > { %v1414_v37 = vmax.f32 %v1240_v63, 0.0 }
 0x12e   : > { %v1412_v40 = vmax.f32 %v1232_v55, 0.0 }
 0x12f   : > { %v1496_v39 = vpack.c.bf16 %v1414_v37, %v1413_v16  ;;  %2405 = vmatpush3.bf16.msra.mxu1 %v3410_v11 }
 0x130   : > { %v2571_v18 = vpop.f32.mrb[28].mxu0  ;;  %v1495_v23 = vpack.c.bf16 %v1412_v40, %v1411_v22 }
 0x131   : > { %v1253_v43 = vadd.f32 %v2571_v18, %v3385_v30  ;;  %v1244_v5 = vpop.f32.mrb[29].mxu0 }
 0x132   : > { %v2572_v15 = vpop.f32.mrb[30].mxu0  ;;  %v1245_v52 = vadd.f32 %v1244_v5, %v3379_v26  ;;  %2406 = vmatprep.subr.bf16.mxu1 %v1495_v23 }
 0x133   : > { %v1256_v19 = vadd.f32 %v2572_v15, %v3387_v31  ;;  %v1247_v58 = vpop.f32.mrb[31].mxu0  ;;  %2407 = vmatpush3.bf16.msra.mxu1 %v3424_v24  ;;  %v1417_v56 = vmax.f32 %v1253_v43, 0.0 }
 0x134   : > { %v1248_v53 = vadd.f32 %v1247_v58, %v3381_v27  ;;  %2408 = vmatprep.subr.bf16.mxu1 %v1496_v39  ;;  %v1415_v30 = vmax.f32 %v1245_v52, 0.0 }
 0x135   : > { %v1418_v11 = vmax.f32 %v1256_v19, 0.0 }
 0x136   : > { %v1416_v20 = vmax.f32 %v1248_v53, 0.0 }
 0x137   : > { %v1498_v60 = vpack.c.bf16 %v1418_v11, %v1417_v56  ;;  %2409 = vmatpush3.bf16.msra.mxu1 %v3420_v48  ;;  %v3482_v48 = vpop.permute.xlu0 %816 }
 0x138   : > { %v2575_v26 = vpop.f32.mrb[32].mxu0  ;;  %v1497_v46 = vpack.c.bf16 %v1416_v20, %v1415_v30 }
 0x139   : > { %v1269_v31 = vadd.f32 %v2575_v26, %v3412_v13  ;;  %v1260_v0 = vpop.f32.mrb[33].mxu0 }
 0x13a   : > { %v2576_v8 = vpop.f32.mrb[34].mxu0  ;;  %v1261_v24 = vadd.f32 %v1260_v0, %v3395_v44  ;;  %2410 = vmatprep.subr.bf16.mxu1 %v1497_v46  ;;  %v2710_v44 = vld [vmem:[%s3725_s3] ss:$16 sps:$4 sm:$0xff]  }
 0x13b   : > { %v1272_v49 = vadd.f32 %v2576_v8, %v3416_v2  ;;  %v1263_v27 = vpop.f32.mrb[35].mxu0  ;;  %2411 = vmatpush3.bf16.msra.mxu1 %v3433_v14  ;;  %v1421_v6 = vmax.f32 %v1269_v31, 0.0  ;;  %v3489_v2 = vpop.permute.xlu1 %821 }
 0x13c   : > { %v1264_v9 = vadd.f32 %v1263_v27, %v3398_v51  ;;  %2412 = vmatprep.subr.bf16.mxu1 %v1498_v60  ;;  %v1419_v12 = vmax.f32 %v1261_v24, 0.0  ;;  %v2713_v51 = vld [vmem:[%s3725_s3 + $0x24] ss:$16 sps:$4 sm:$0xff]   ;;  %v737_v55 = vpop.permute.xlu0 %736 }
 0x13d   : > { %v1422_v62 = vmax.f32 %v1272_v49, 0.0  ;;  %v2719_v24 = vld [vmem:[%s3725_s3 + $0x64] ss:$16 sps:$4 sm:$0xff]  }
 0x13e   : > { %v1420_v32 = vmax.f32 %v1264_v9, 0.0 }
 0x13f   : > { %v3484_v13 = vpack.c.bf16 %v1422_v62, %v1421_v6  ;;  %2413 = vmatpush3.bf16.msra.mxu1 %v3431_v7  ;;  %v742_v18 = vpop.permute.xlu1 %741 }
 0x140   : > { %v2579_v14 = vpop.f32.mrb[36].mxu0  ;;  %v3495_v61 = vpack.c.bf16 %v1420_v32, %v1419_v12  ;;  %v3511_v58 = vpop.permute.xlu0 %826 }
 0x141   : > { %v1285_v28 = vadd.f32 %v2579_v14, %v3443_v50  ;;  %v1276_v63 = vpop.f32.mrb[37].mxu0  ;;  %v2715_v50 = vld [vmem:[%s3725_s3 + $0x20] ss:$16 sps:$4 sm:$0xff]  }
 0x142   : > { %v2580_v36 = vpop.f32.mrb[38].mxu0  ;;  %v1277_v16 = vadd.f32 %v1276_v63, %v3426_v59  ;;  %1804 = vmatmul.mubr.bf16.vlgmr.msra.gmra.mrb[0].mxu1 %v2710_v44 }
 0x143   : > { %v1288_v37 = vadd.f32 %v2580_v36, %v3446_v41  ;;  %v1279_v22 = vpop.f32.mrb[39].mxu0  ;;  %1811 = vmatprep.mubr.bf16.mxu1 %v2713_v51  ;;  %v1425_v7 = vmax.f32 %v1285_v28, 0.0  ;;  %v2716_v41 = vld [vmem:[%s3725_s3 + $0x44] ss:$16 sps:$4 sm:$0xff]   ;;  %v3514_v30 = vpop.permute.xlu1 %831  ;;  %v2721_v36 = vld [vmem:[%s3725_s3 + $0x60] ss:$16 sps:$4 sm:$0xff]  }
 0x144   : > { %v1280_v40 = vadd.f32 %v1279_v22, %v3429_v4  ;;  %v1423_v23 = vmax.f32 %v1277_v16, 0.0 }
 0x145   : > { %v1426_v39 = vmax.f32 %v1288_v37, 0.0 }
 0x146   : > { %v1424_v5 = vmax.f32 %v1280_v40, 0.0 }
 0x147   : > { %v3501_v43 = vpack.c.bf16 %v1426_v39, %v1425_v7  ;;  %v752_v27 = vpop.permute.xlu1 %751 }
 0x148   : > { %v2583_v59 = vpop.f32.mrb[40].mxu0  ;;  %v3509_v15 = vpack.c.bf16 %v1424_v5, %v1423_v23 }
 0x149   : > { %v1301_v52 = vadd.f32 %v2583_v59, %v727_v25  ;;  %v1292_v19 = vpop.f32.mrb[41].mxu0  ;;  %v2718_v25 = vld [vmem:[%s3725_s3 + $0x40] ss:$16 sps:$4 sm:$0xff]  }
 0x14a   : > { %v1293_v4 = vadd.f32 %v1292_v19, %v3460_v17  ;;  %v2584_v56 = vpop.f32.mrb[42].mxu0  ;;  %1812 = vmatmul.mubr.bf16.gmra.mrb[4].mxu1 %v2715_v50  ;;  %v747_v17 = vpop.permute.xlu0 %746 }
 0x14b   : > { %v1304_v11 = vadd.f32 %v2584_v56, %v732_v21  ;;  %v1295_v53 = vpop.f32.mrb[43].mxu0  ;;  %1819 = vmatprep.mubr.bf16.mxu1 %v2716_v41  ;;  %v1429_v20 = vmax.f32 %v1301_v52, 0.0 }
 0x14c   : > { %v1296_v60 = vadd.f32 %v1295_v53, %v3464_v38  ;;  %v1427_v46 = vmax.f32 %v1293_v4, 0.0 }
 0x14d   : > { %v1430_v26 = vmax.f32 %v1304_v11, 0.0 }
 0x14e   : > { %v1428_v31 = vmax.f32 %v1296_v60, 0.0 }
 0x14f   : > { %v3517_v0 = vpack.c.bf16 %v1430_v26, %v1429_v20 }
 0x150   : > { %v3522_v8 = vpack.c.bf16 %v1428_v31, %v1427_v46  ;;  %v2587_v21 = vpop.f32.mrb[44].mxu0 }
 0x151   : > { %v1317_v38 = vadd.f32 %v2587_v21, %v747_v17  ;;  %v1308_v49 = vpop.f32.mrb[45].mxu0 }
 0x152   : > { %v1309_v6 = vadd.f32 %v1308_v49, %v737_v55  ;;  %v2588_v62 = vpop.f32.mrb[46].mxu0  ;;  %1820 = vmatmul.mubr.bf16.gmra.mrb[8].mxu1 %v2718_v25  ;;  %v2722_v55 = vld [vmem:[%s3725_s3 + $0x84] ss:$16 sps:$4 sm:$0xff]  }
 0x153   : > { %v1320_v9 = vadd.f32 %v2588_v62, %v752_v27  ;;  %v1311_v12 = vpop.f32.mrb[47].mxu0  ;;  %1827 = vmatprep.mubr.bf16.mxu1 %v2719_v24  ;;  %v1433_v44 = vmax.f32 %v1317_v38, 0.0 }
 0x154   : > { %v1312_v32 = vadd.f32 %v1311_v12, %v742_v18  ;;  %v1431_v51 = vmax.f32 %v1309_v6, 0.0 }
 0x155   : > { %v1434_v14 = vmax.f32 %v1320_v9, 0.0 }
 0x156   : > { %v1432_v28 = vmax.f32 %v1312_v32, 0.0 }
 0x157   : > { %v3527_v63 = vpack.c.bf16 %v1434_v14, %v1433_v44 }
 0x158   : > { %v3532_v16 = vpack.c.bf16 %v1432_v28, %v1431_v51  ;;  %v2591_v37 = vpop.f32.mrb[48].mxu0 }
 0x159   : > { %v1333_v22 = vadd.f32 %v2591_v37, %v3404_v42  ;;  %v1324_v7 = vpop.f32.mrb[49].mxu0  ;;  %v2724_v42 = vld [vmem:[%s3725_s3 + $0x80] ss:$16 sps:$4 sm:$0xff]  }
 0x15a   : > { %v1325_v39 = vadd.f32 %v1324_v7, %v3389_v34  ;;  %v2592_v40 = vpop.f32.mrb[50].mxu0  ;;  %1828 = vmatmul.mubr.bf16.gmra.mrb[12].mxu1 %v2721_v36  ;;  %v2725_v34 = vld [vmem:[%s3725_s3 + $0xa4] ss:$16 sps:$4 sm:$0xff]  }
 0x15b   : > { %v1336_v18 = vadd.f32 %v2592_v40, %v3407_v3  ;;  %v1327_v23 = vpop.f32.mrb[51].mxu0  ;;  %1835 = vmatprep.mubr.bf16.mxu1 %v2722_v55  ;;  %v1437_v50 = vmax.f32 %v1333_v22, 0.0 }
 0x15c   : > { %v1328_v5 = vadd.f32 %v1327_v23, %v3391_v35  ;;  %v1435_v41 = vmax.f32 %v1325_v39, 0.0  ;;  %v2745_v23 = vld [vmem:[%s3725_s3 + $0x68] ss:$16 sps:$4 sm:$0xff]  }
 0x15d   : > { %v1438_v59 = vmax.f32 %v1336_v18, 0.0  ;;  %v2743_v18 = vld [vmem:[%s3725_s3 + $0x6c] ss:$16 sps:$4 sm:$0xff]  }
 0x15e   : > { %v1436_v52 = vmax.f32 %v1328_v5, 0.0  ;;  %v2746_v5 = vld [vmem:[%s3725_s3 + $0x8c] ss:$16 sps:$4 sm:$0xff]  }
 0x15f   : > { %v1508_v19 = vpack.c.bf16 %v1438_v59, %v1437_v50  ;;  %v2748_v50 = vld [vmem:[%s3725_s3 + $0x88] ss:$16 sps:$4 sm:$0xff]   ;;  %v2749_v59 = vld [vmem:[%s3725_s3 + $0xac] ss:$16 sps:$4 sm:$0xff]  }
 0x160   : > { %v1507_v4 = vpack.c.bf16 %v1436_v52, %v1435_v41  ;;  %v2595_v56 = vpop.f32.mrb[52].mxu0  ;;  %v2751_v41 = vld [vmem:[%s3725_s3 + $0xa8] ss:$16 sps:$4 sm:$0xff]   ;;  %v2752_v52 = vld [vmem:[%s3725_s3 + $0xcc] ss:$16 sps:$4 sm:$0xff]  }
 0x161   : > { %v1349_v3 = vadd.f32 %v2595_v56, %v3436_v33  ;;  %v1340_v11 = vpop.f32.mrb[53].mxu0 }
 0x162   : > { %v1341_v35 = vadd.f32 %v1340_v11, %v3418_v45  ;;  %v2596_v53 = vpop.f32.mrb[54].mxu0  ;;  %2462 = vmatprep.subr.bf16.mxu1 %v1507_v4  ;;  %1836 = vmatmul.mubr.bf16.gmra.mrb[16].mxu1 %v2724_v42  ;;  %v2727_v45 = vld [vmem:[%s3725_s3 + $0xa0] ss:$16 sps:$4 sm:$0xff]   ;;  %v2755_v42 = vld [vmem:[%s3725_s3 + $0xec] ss:$16 sps:$4 sm:$0xff]  }
 0x163   : > { %v1352_v60 = vadd.f32 %v2596_v53, %v3440_v29  ;;  %v1343_v20 = vpop.f32.mrb[55].mxu0  ;;  %2463 = vmatpush3.bf16.msra.mxu1 %v3495_v61  ;;  %1843 = vmatprep.mubr.bf16.mxu1 %v2725_v34  ;;  %v1441_v46 = vmax.f32 %v1349_v3, 0.0  ;;  %v2757_v4 = vld [vmem:[%s3725_s3 + $0xe8] ss:$16 sps:$4 sm:$0xff]  }
 0x164   : > { %v1344_v26 = vadd.f32 %v1343_v20, %v3422_v54  ;;  %2464 = vmatprep.subr.bf16.mxu1 %v1508_v19  ;;  %v1439_v25 = vmax.f32 %v1341_v35, 0.0  ;;  %v2728_v54 = vld [vmem:[%s3725_s3 + $0xc4] ss:$16 sps:$4 sm:$0xff]   ;;  %v2754_v19 = vld [vmem:[%s3725_s3 + $0xc8] ss:$16 sps:$4 sm:$0xff]  }
 0x165   : > { %v1442_v31 = vmax.f32 %v1352_v60, 0.0  ;;  %v2758_v60 = vld [vmem:[%s3727_s5] sm:$0xff]  }
 0x166   : > { %v1440_v17 = vmax.f32 %v1344_v26, 0.0  ;;  %2621 = vmatprep.mubr.bf16.mxu0 %v2758_v60 }
 0x167   : > { %v1510_v33 = vpack.c.bf16 %v1442_v31, %v1441_v46  ;;  %2465 = vmatpush3.bf16.msra.mxu1 %v3484_v13 }
 0x168   : > { %v1509_v21 = vpack.c.bf16 %v1440_v17, %v1439_v25  ;;  %v2599_v29 = vpop.f32.mrb[56].mxu0 }
 0x169   : > { %v1365_v61 = vadd.f32 %v2599_v29, %v3468_v47  ;;  %v1356_v24 = vpop.f32.mrb[57].mxu0 }
 0x16a   : > { %v1357_v38 = vadd.f32 %v1356_v24, %v3452_v1  ;;  %v2600_v49 = vpop.f32.mrb[58].mxu0  ;;  %2466 = vmatprep.subr.bf16.mxu1 %v1509_v21  ;;  %1844 = vmatmul.mubr.bf16.gmra.mrb[20].mxu1 %v2727_v45  ;;  %v2730_v1 = vld [vmem:[%s3725_s3 + $0xc0] ss:$16 sps:$4 sm:$0xff]  }
 0x16b   : > { %v1368_v27 = vadd.f32 %v2600_v49, %v3472_v57  ;;  %v1359_v6 = vpop.f32.mrb[59].mxu0  ;;  %2467 = vmatpush3.bf16.msra.mxu1 %v3509_v15  ;;  %1851 = vmatprep.mubr.bf16.mxu1 %v2728_v54  ;;  %v1445_v13 = vmax.f32 %v1365_v61, 0.0 }
 0x16c   : > { %v1360_v62 = vadd.f32 %v1359_v6, %v3454_v10  ;;  %2468 = vmatprep.subr.bf16.mxu1 %v1510_v33  ;;  %v1443_v12 = vmax.f32 %v1357_v38, 0.0  ;;  %v2731_v10 = vld [vmem:[%s3725_s3 + $0xe4] ss:$16 sps:$4 sm:$0xff]  }
 0x16d   : > { %v1446_v9 = vmax.f32 %v1368_v27, 0.0 }
 0x16e   : > { %v1444_v32 = vmax.f32 %v1360_v62, 0.0 }
 0x16f   : > { %v1512_v47 = vpack.c.bf16 %v1446_v9, %v1445_v13  ;;  %2469 = vmatpush3.bf16.msra.mxu1 %v3501_v43 }
 0x170   : > { %v1511_v44 = vpack.c.bf16 %v1444_v32, %v1443_v12  ;;  %v2603_v57 = vpop.f32.mrb[60].mxu0 }
 0x171   : > { %v1381_v15 = vadd.f32 %v2603_v57, %v3511_v58  ;;  %v1372_v14 = vpop.f32.mrb[61].mxu0 }
 0x172   : > { %v1373_v51 = vadd.f32 %v1372_v14, %v3482_v48  ;;  %v2604_v28 = vpop.f32.mrb[62].mxu0  ;;  %2470 = vmatprep.subr.bf16.mxu1 %v1511_v44  ;;  %1852 = vmatmul.mubr.bf16.gmra.mrb[24].mxu1 %v2730_v1  ;;  %v2733_v48 = vld [vmem:[%s3725_s3 + $0xe0] ss:$16 sps:$4 sm:$0xff]  }
 0x173   : > { %v1384_v36 = vadd.f32 %v2604_v28, %v3514_v30  ;;  %v1375_v37 = vpop.f32.mrb[63].mxu0  ;;  %2471 = vmatpush3.bf16.msra.mxu1 %v3522_v8  ;;  %1859 = vmatprep.mubr.bf16.mxu1 %v2731_v10  ;;  %v1449_v43 = vmax.f32 %v1381_v15, 0.0  ;;  %v2734_v30 = vld [vmem:[%s3725_s3 + $0x8] ss:$16 sps:$4 sm:$0xff]  }
 0x174   : > { %v1376_v55 = vadd.f32 %v1375_v37, %v3489_v2  ;;  %2472 = vmatprep.subr.bf16.mxu1 %v1512_v47  ;;  %v1447_v7 = vmax.f32 %v1373_v51, 0.0  ;;  %v2736_v2 = vld [vmem:[%s3725_s3 + $0xc] ss:$16 sps:$4 sm:$0xff]   ;;  %v2739_v8 = vld [vmem:[%s3725_s3 + $0x28] ss:$16 sps:$4 sm:$0xff]  }
 0x175   : > { %v1450_v22 = vmax.f32 %v1384_v36, 0.0 }
 0x176   : > { %v1448_v39 = vmax.f32 %v1376_v55, 0.0 }
 0x177   : > { %v1514_v58 = vpack.c.bf16 %v1450_v22, %v1449_v43  ;;  %2473 = vmatpush3.bf16.msra.mxu1 %v3517_v0  ;;  %v2737_v0 = vld [vmem:[%s3725_s3 + $0x2c] ss:$16 sps:$4 sm:$0xff]  }
 0x178   : > { %v1513_v40 = vpack.c.bf16 %v1448_v39, %v1447_v7 }
 0x17a   : > { %2474 = vmatprep.subr.bf16.mxu1 %v1513_v40  ;;  %1860 = vmatmul.mubr.bf16.gmra.mrb[28].mxu1 %v2733_v48 }
 0x17b   : > { %2475 = vmatpush3.bf16.msra.mxu1 %v3532_v16  ;;  %1900 = vmatprep.mubr.bf16.mxu1 %v2736_v2  ;;  %v2740_v16 = vld [vmem:[%s3725_s3 + $0x4c] ss:$16 sps:$4 sm:$0xff]  }
 0x17c   : > { %2476 = vmatprep.subr.bf16.mxu1 %v1514_v58 }
 0x17f   : > { %2477 = vmatpush3.bf16.msra.mxu1 %v3527_v63  ;;  %v2742_v63 = vld [vmem:[%s3725_s3 + $0x48] ss:$16 sps:$4 sm:$0xff]  }
 0x182   : > { %1901 = vmatmul.mubr.bf16.vlgmr.msra.gmra.mrb[32].mxu1 %v2734_v30 }
 0x183   : > { %1908 = vmatprep.mubr.bf16.mxu1 %v2737_v0  ;;  %v1534_v0 = vpop.permute.xlu0 %1533 }
 0x18a   : > { %1909 = vmatmul.mubr.bf16.gmra.mrb[36].mxu1 %v2739_v8 }
 0x18b   : > { %1916 = vmatprep.mubr.bf16.mxu1 %v2740_v16 }
 0x192   : > { %1917 = vmatmul.mubr.bf16.gmra.mrb[40].mxu1 %v2742_v63 }
 0x193   : > { %1924 = vmatprep.mubr.bf16.mxu1 %v2743_v18 }
 0x19a   : > { %1925 = vmatmul.mubr.bf16.gmra.mrb[44].mxu1 %v2745_v23  ;;  %v1539_v23 = vpop.permute.xlu1 %1538 }
 0x19b   : > { %1932 = vmatprep.mubr.bf16.mxu1 %v2746_v5 }
 0x1a2   : > { %1933 = vmatmul.mubr.bf16.gmra.mrb[48].mxu1 %v2748_v50 }
 0x1a3   : > { %1940 = vmatprep.mubr.bf16.mxu1 %v2749_v59 }
 0x1aa   : > { %1941 = vmatmul.mubr.bf16.gmra.mrb[52].mxu1 %v2751_v41 }
 0x1ab   : > { %1948 = vmatprep.mubr.bf16.mxu1 %v2752_v52 }
 0x1b2   : > { %1949 = vmatmul.mubr.bf16.gmra.mrb[56].mxu1 %v2754_v19 }
 0x1b3   : > { %1956 = vmatprep.mubr.bf16.mxu1 %v2755_v42 }
 0x1ba   : > { %1957 = vmatmul.mubr.bf16.gmra.mrb[60].mxu1 %v2757_v4 }
 0x215   : > { %v2414_v56 = vpop.f32.mrb[0].mxu1 }
 0x216   : > { %v2415_v34 = vpop.f32.mrb[1].mxu1 }
 0x217   : > { %v2416_v3 = vadd.f32 %v2415_v34, %v2414_v56  ;;  %v2417_v11 = vpop.f32.mrb[2].mxu1  ;;  %v1544_v56 = vpop.permute.xlu0 %1543 }
 0x218   : > { %v2418_v35 = vpop.f32.mrb[3].mxu1 }
 0x219   : > { %v2419_v53 = vadd.f32 %v2418_v35, %v2417_v11  ;;  %v1806_v16 = vadd.f32 %v2416_v3, %v1534_v0 }
 0x21b   : > { %v1809_v50 = vadd.f32 %v2419_v53, %v1539_v23 }
 0x21d   : > { %v2420_v20 = vpop.f32.mrb[4].mxu1 }
 0x21e   : > { %v2421_v26 = vpop.f32.mrb[5].mxu1 }
 0x21f   : > { %v2422_v46 = vadd.f32 %v2421_v26, %v2420_v20  ;;  %v2423_v31 = vpop.f32.mrb[6].mxu1  ;;  %v1549_v26 = vpop.permute.xlu1 %1548 }
 0x220   : > { %v2424_v25 = vpop.f32.mrb[7].mxu1 }
 0x221   : > { %v2425_v17 = vadd.f32 %v2424_v25, %v2423_v31  ;;  %v1814_v11 = vadd.f32 %v2422_v46, %v1544_v56 }
 0x223   : > { %v1817_v3 = vadd.f32 %v2425_v17, %v1549_v26 }
 0x225   : > { %v2426_v33 = vpop.f32.mrb[8].mxu1 }
 0x226   : > { %v2427_v45 = vpop.f32.mrb[9].mxu1 }
 0x227   : > { %v3633_v21 = vadd.f32 %v2427_v45, %v2426_v33  ;;  %v2429_v29 = vpop.f32.mrb[10].mxu1 }
 0x228   : > { %v2430_v54 = vpop.f32.mrb[11].mxu1 }
 0x229   : > { %v3635_v61 = vadd.f32 %v2430_v54, %v2429_v29 }
 0x22d   : > { %v2432_v24 = vpop.f32.mrb[12].mxu1 }
 0x22e   : > { %v2433_v38 = vpop.f32.mrb[13].mxu1 }
 0x22f   : > { %v3637_v49 = vadd.f32 %v2433_v38, %v2432_v24  ;;  %v2435_v27 = vpop.f32.mrb[14].mxu1  ;;  %v1554_v24 = vpop.permute.xlu0 %1553 }
 0x230   : > { %v2436_v6 = vpop.f32.mrb[15].mxu1 }
 0x231   : > { %v3639_v62 = vadd.f32 %v2436_v6, %v2435_v27  ;;  %v1822_v27 = vadd.f32 %v3633_v21, %v1554_v24 }
 0x235   : > { %v2438_v13 = vpop.f32.mrb[16].mxu1 }
 0x236   : > { %v2439_v9 = vpop.f32.mrb[17].mxu1 }
 0x237   : > { %v3641_v12 = vadd.f32 %v2439_v9, %v2438_v13  ;;  %v2441_v32 = vpop.f32.mrb[18].mxu1  ;;  %v1559_v9 = vpop.permute.xlu1 %1558 }
 0x238   : > { %v2442_v47 = vpop.f32.mrb[19].mxu1 }
 0x239   : > { %v3643_v1 = vadd.f32 %v2442_v47, %v2441_v32  ;;  %v1825_v47 = vadd.f32 %v3635_v61, %v1559_v9 }
 0x23d   : > { %v2444_v44 = vpop.f32.mrb[20].mxu1 }
 0x23e   : > { %v2445_v57 = vpop.f32.mrb[21].mxu1 }
 0x23f   : > { %v3645_v10 = vadd.f32 %v2445_v57, %v2444_v44  ;;  %v2447_v15 = vpop.f32.mrb[22].mxu1 }
 0x240   : > { %v2448_v14 = vpop.f32.mrb[23].mxu1 }
 0x241   : > { %v3647_v51 = vadd.f32 %v2448_v14, %v2447_v15 }
 0x245   : > { %v2450_v28 = vpop.f32.mrb[24].mxu1 }
 0x246   : > { %v2451_v36 = vpop.f32.mrb[25].mxu1 }
 0x247   : > { %v3649_v37 = vadd.f32 %v2451_v36, %v2450_v28  ;;  %v2453_v55 = vpop.f32.mrb[26].mxu1  ;;  %v1564_v36 = vpop.permute.xlu0 %1563 }
 0x248   : > { %v2454_v43 = vpop.f32.mrb[27].mxu1 }
 0x249   : > { %v3651_v22 = vadd.f32 %v2454_v43, %v2453_v55  ;;  %v1830_v43 = vadd.f32 %v3637_v49, %v1564_v36 }
 0x24b   : > { %v1574_v23 = vpop.permute.xlu0 %1573 }
 0x24d   : > { %v2456_v7 = vpop.f32.mrb[28].mxu1 }
 0x24e   : > { %v2457_v39 = vpop.f32.mrb[29].mxu1 }
 0x24f   : > { %v3653_v58 = vadd.f32 %v2457_v39, %v2456_v7  ;;  %v2459_v48 = vpop.f32.mrb[30].mxu1 }
 0x250   : > { %v2460_v40 = vpop.f32.mrb[31].mxu1 }
 0x251   : > { %v3655_v2 = vadd.f32 %v2460_v40, %v2459_v48  ;;  %v1569_v48 = vpop.permute.xlu1 %1568 }
 0x255   : > { %v2478_v30 = vpop.f32.mrb[32].mxu1 }
 0x256   : > { %v2479_v8 = vpop.f32.mrb[33].mxu1 }
 0x257   : > { %v2480_v63 = vadd.f32 %v2479_v8, %v2478_v30  ;;  %v2481_v18 = vpop.f32.mrb[34].mxu1  ;;  %v1833_v30 = vadd.f32 %v3639_v62, %v1569_v48 }
 0x258   : > { %v2482_v5 = vpop.f32.mrb[35].mxu1 }
 0x259   : > { %v1903_v59 = vadd.f32 %v2480_v63, %v1806_v16  ;;  %v2483_v41 = vadd.f32 %v2482_v5, %v2481_v18 }
 0x25b   : > { %v1906_v52 = vadd.f32 %v2483_v41, %v1809_v50  ;;  %v1965_v19 = vmax.f32 %v1903_v59, 0.0  ;;  %v1838_v50 = vadd.f32 %v3641_v12, %v1574_v23 }
 0x25d   : > { %v1966_v42 = vmax.f32 %v1906_v52, 0.0  ;;  %v2484_v4 = vpop.f32.mrb[36].mxu1  ;;  %v1579_v52 = vpop.permute.xlu1 %1578 }
 0x25e   : > { %v2485_v34 = vpop.f32.mrb[37].mxu1 }
 0x25f   : > { %v2486_v35 = vadd.f32 %v2485_v34, %v2484_v4  ;;  %v2487_v60 = vpop.f32.mrb[38].mxu1  ;;  %v1985_v20 = vpack.c.bf16 %v1966_v42, %v1965_v19  ;;  %v1841_v42 = vadd.f32 %v3643_v1, %v1579_v52 }
 0x260   : > { %v2488_v31 = vpop.f32.mrb[39].mxu1 }
 0x261   : > { %v1911_v25 = vadd.f32 %v2486_v35, %v1814_v11  ;;  %v2489_v33 = vadd.f32 %v2488_v31, %v2487_v60  ;;  %2605 = vmatprep.subr.bf16.mxu0 %v1985_v20  ;;  %v1584_v60 = vpop.permute.xlu0 %1583 }
 0x262   : > { %2606 = vmatpush3.bf16.msra.mxu0 %v1985_v20  ;;  %v1846_v26 = vadd.f32 %v3645_v10, %v1584_v60 }
 0x263   : > { %v1914_v53 = vadd.f32 %v2489_v33, %v1817_v3  ;;  %v1967_v45 = vmax.f32 %v1911_v25, 0.0  ;;  %v1589_v25 = vpop.permute.xlu1 %1588 }
 0x265   : > { %v1968_v29 = vmax.f32 %v1914_v53, 0.0  ;;  %v2490_v54 = vpop.f32.mrb[40].mxu1  ;;  %v1849_v53 = vadd.f32 %v3647_v51, %v1589_v25 }
 0x266   : > { %v2491_v38 = vpop.f32.mrb[41].mxu1 }
 0x267   : > { %v2492_v6 = vadd.f32 %v2491_v38, %v2490_v54  ;;  %v2493_v46 = vpop.f32.mrb[42].mxu1  ;;  %v1986_v13 = vpack.c.bf16 %v1968_v29, %v1967_v45 }
 0x268   : > { %v2494_v32 = vpop.f32.mrb[43].mxu1 }
 0x269   : > { %v1919_v17 = vadd.f32 %v2492_v6, %v1822_v27  ;;  %v2495_v44 = vadd.f32 %v2494_v32, %v2493_v46  ;;  %2607 = vmatprep.subr.bf16.mxu0 %v1986_v13  ;;  %v1594_v27 = vpop.permute.xlu0 %1593  ;;  %v1599_v32 = vpop.permute.xlu1 %1598 }
 0x26a   : > { %2608 = vmatpush3.bf16.msra.mxu0 %v1986_v13  ;;  %v1854_v46 = vadd.f32 %v3649_v37, %v1594_v27 }
 0x26b   : > { %v1922_v57 = vadd.f32 %v2495_v44, %v1825_v47  ;;  %v1969_v15 = vmax.f32 %v1919_v17, 0.0  ;;  %v1857_v17 = vadd.f32 %v3651_v22, %v1599_v32 }
 0x26d   : > { %v1970_v14 = vmax.f32 %v1922_v57, 0.0  ;;  %v2496_v28 = vpop.f32.mrb[44].mxu1  ;;  %v1604_v36 = vpop.permute.xlu0 %1603 }
 0x26e   : > { %v2497_v55 = vpop.f32.mrb[45].mxu1 }
 0x26f   : > { %v2498_v21 = vadd.f32 %v2497_v55, %v2496_v28  ;;  %v2499_v7 = vpop.f32.mrb[46].mxu1  ;;  %v1987_v39 = vpack.c.bf16 %v1970_v14, %v1969_v15 }
 0x270   : > { %v2500_v40 = vpop.f32.mrb[47].mxu1 }
 0x271   : > { %v1927_v61 = vadd.f32 %v2498_v21, %v1830_v43  ;;  %v2501_v0 = vadd.f32 %v2500_v40, %v2499_v7  ;;  %2609 = vmatprep.subr.bf16.mxu0 %v1987_v39  ;;  %v1862_v43 = vadd.f32 %v3653_v58, %v1604_v36  ;;  %v2759_v58 = vld [vmem:[%s3727_s5 + $0x8] sm:$0xff]  }
 0x272   : > { %2610 = vmatpush3.bf16.msra.mxu0 %v1987_v39  ;;  %v1609_v39 = vpop.permute.xlu1 %1608 }
 0x273   : > { %v1930_v8 = vadd.f32 %v2501_v0, %v1833_v30  ;;  %v1971_v16 = vmax.f32 %v1927_v61, 0.0  ;;  %v1865_v40 = vadd.f32 %v3655_v2, %v1609_v39  ;;  %v2000_v2 = vpop.permute.xlu0 %1999 }
 0x275   : > { %v1972_v63 = vmax.f32 %v1930_v8, 0.0  ;;  %v2502_v18 = vpop.f32.mrb[48].mxu1 }
 0x276   : > { %v2503_v5 = vpop.f32.mrb[49].mxu1 }
 0x277   : > { %v2504_v49 = vadd.f32 %v2503_v5, %v2502_v18  ;;  %v2505_v59 = vpop.f32.mrb[50].mxu1  ;;  %v1988_v41 = vpack.c.bf16 %v1972_v63, %v1971_v16  ;;  %v2831_v63 = vmov 0.0   ;;  %v2005_v18 = vpop.permute.xlu1 %2004 }
 0x278   : > { %v2506_v19 = vpop.f32.mrb[51].mxu1  ;;  %v2010_v23 = vpop.permute.xlu0 %2009 }
 0x279   : > { %v1935_v62 = vadd.f32 %v2504_v49, %v1838_v50  ;;  %v2507_v4 = vadd.f32 %v2506_v19, %v2505_v59  ;;  %2611 = vmatprep.subr.bf16.mxu0 %v1988_v41 }
 0x27a   : > { %2612 = vmatpush3.bf16.msra.mxu0 %v1988_v41 }
 0x27b   : > { %v1938_v56 = vadd.f32 %v2507_v4, %v1841_v42  ;;  %v1973_v34 = vmax.f32 %v1935_v62, 0.0  ;;  %v2015_v59 = vpop.permute.xlu1 %2014 }
 0x27d   : > { %v1974_v11 = vmax.f32 %v1938_v56, 0.0  ;;  %v2508_v35 = vpop.f32.mrb[52].mxu1 }
 0x27e   : > { %v2509_v20 = vpop.f32.mrb[53].mxu1 }
 0x27f   : > { %v2510_v12 = vadd.f32 %v2509_v20, %v2508_v35  ;;  %v2511_v31 = vpop.f32.mrb[54].mxu1  ;;  %v1989_v3 = vpack.c.bf16 %v1974_v11, %v1973_v34  ;;  %v2760_v20 = vld [vmem:[%s3729_s7] sm:$0xff]  }
 0x280   : > { %v2512_v33 = vpop.f32.mrb[55].mxu1 }
 0x281   : > { %v1943_v1 = vadd.f32 %v2510_v12, %v1846_v26  ;;  %v2513_v45 = vadd.f32 %v2512_v33, %v2511_v31  ;;  %2613 = vmatprep.subr.bf16.mxu0 %v1989_v3  ;;  %v2091_v26 = vpop.permute.xlu0 %2090  ;;  %v2096_v12 = vpop.permute.xlu1 %2095 }
 0x282   : > { %2614 = vmatpush3.bf16.msra.mxu0 %v1989_v3 }
 0x283   : > { %v1946_v29 = vadd.f32 %v2513_v45, %v1849_v53  ;;  %v1975_v54 = vmax.f32 %v1943_v1, 0.0 }
 0x285   : > { %v1976_v24 = vmax.f32 %v1946_v29, 0.0  ;;  %v2514_v38 = vpop.f32.mrb[56].mxu1 }
 0x286   : > { %v2515_v6 = vpop.f32.mrb[57].mxu1 }
 0x287   : > { %v2516_v10 = vadd.f32 %v2515_v6, %v2514_v38  ;;  %v2517_v13 = vpop.f32.mrb[58].mxu1  ;;  %v1990_v9 = vpack.c.bf16 %v1976_v24, %v1975_v54  ;;  %v2155_v54 = vpop.permute.xlu0 %2154  ;;  %v2177_v6 = vlaneseq }
 0x288   : > { %v2518_v47 = vpop.f32.mrb[59].mxu1  ;;  %v2160_v24 = vpop.permute.xlu1 %2159 }
 0x289   : > { %v1951_v51 = vadd.f32 %v2516_v10, %v1854_v46  ;;  %v2519_v44 = vadd.f32 %v2518_v47, %v2517_v13  ;;  %2615 = vmatprep.subr.bf16.mxu0 %v1990_v9  ;;  %v2178_v13 = vshrl.u32 %v2177_v6, 7 }
 0x28a   : > { %2616 = vmatpush3.bf16.msra.mxu0 %v1990_v9 }
 0x28b   : > { %v1954_v57 = vadd.f32 %v2519_v44, %v1857_v17  ;;  %v1977_v15 = vmax.f32 %v1951_v51, 0.0  ;;  %v2179_v47 = vsub.s32 0, %v2178_v13  ;;  %v2175_v51 = vpop.permute.xlu0 %2174 }
 0x28d   : > { %v1978_v14 = vmax.f32 %v1954_v57, 0.0  ;;  %v2520_v28 = vpop.f32.mrb[60].mxu1  ;;  %v2180_v57 = vrot.slane %v2175_v51, %v2179_v47 }
 0x28e   : > { %v2521_v55 = vpop.f32.mrb[61].mxu1 }
 0x28f   : > { %v2522_v37 = vadd.f32 %v2521_v55, %v2520_v28  ;;  %v2523_v21 = vpop.f32.mrb[62].mxu1  ;;  %v1991_v7 = vpack.c.bf16 %v1978_v14, %v1977_v15 }
 0x290   : > { %v2524_v48 = vpop.f32.mrb[63].mxu1 }
 0x291   : > { %v1959_v22 = vadd.f32 %v2522_v37, %v1862_v43  ;;  %v2525_v30 = vadd.f32 %v2524_v48, %v2523_v21  ;;  %2617 = vmatprep.subr.bf16.mxu0 %v1991_v7 }
 0x292   : > { %2618 = vmatpush3.bf16.msra.mxu0 %v1991_v7 }
 0x293   : > { %v1962_v61 = vadd.f32 %v2525_v30, %v1865_v40  ;;  %v1979_v0 = vmax.f32 %v1959_v22, 0.0 }
 0x295   : > { %v1980_v8 = vmax.f32 %v1962_v61, 0.0 }
 0x297   : > { %v1992_v16 = vpack.c.bf16 %v1980_v8, %v1979_v0 }
 0x299   : > { %2619 = vmatprep.subr.bf16.mxu0 %v1992_v16 }
 0x29a   : > { %2620 = vmatpush3.bf16.msra.mxu0 %v1992_v16 }
 0x29b   : > { %2625 = vmatprep.subr.bf16.mxu0 %v2831_v63 }
 0x29d   : > { %2622 = vmatmul.mubr.bf16.vlgmr.msra.gmra.mrb[64].mxu0 %v2759_v58 }
 0x29e   : > { %2629 = vmatprep.mubr.msk.bf16.mxu0 %vm2832_vm3, %v2831_v63 }
 0x370   : > { %v2623_v5 = vpop.f32.mrb[64].mxu0 }
 0x371   : > { %v2072_v50 = vadd.f32 %v2623_v5, %v2010_v23  ;;  %v2063_v49 = vpop.f32.mrb[65].mxu0 }
 0x372   : > { %v2064_v41 = vadd.f32 %v2063_v49, %v2000_v2  ;;  %v2624_v52 = vpop.f32.mrb[66].mxu0 }
 0x373   : > { %v2075_v19 = vadd.f32 %v2624_v52, %v2015_v59  ;;  %v2066_v42 = vpop.f32.mrb[67].mxu0  ;;  %v2080_v4 = vmax.f32 %v2072_v50, 0.0 }
 0x374   : > { %v2067_v62 = vadd.f32 %v2066_v42, %v2005_v18  ;;  %v2078_v34 = vmax.f32 %v2064_v41, 0.0 }
 0x375   : > { %v2081_v56 = vmax.f32 %v2075_v19, 0.0 }
 0x376   : > { %v2079_v11 = vmax.f32 %v2067_v62, 0.0 }
 0x377   : > { %v2085_v35 = vpack.c.bf16 %v2081_v56, %v2080_v4 }
 0x378   : > { %v2084_v60 = vpack.c.bf16 %v2079_v11, %v2078_v34 }
 0x37a   : > { %2626 = vmatpush3.bf16.msra.mxu0 %v2084_v60 }
 0x37b   : > { %2627 = vmatprep.subr.bf16.mxu0 %v2831_v63 }
 0x37e   : > { %2628 = vmatpush3.bf16.msra.mxu0 %v2085_v35 }
 0x381   : > { %2630 = vmatmul.mubr.msk.bf16.vlgmr.msra.gmra.mrb[68].mxu0 %vm2103_vm4, %v2760_v20 }
 0x454   : > { %v2141_v31 = vpop.f32.mrb[68].mxu0 }
 0x455   : > { %v2142_v3 = vadd.f32 %v2141_v31, %v2091_v26  ;;  %v2631_v25 = vpop.f32.mrb[69].mxu0 }
 0x456   : > { %v2144_v33 = vpop.f32.mrb[70].mxu0 }
 0x457   : > { %v2148_v53 = vmax.f32 %v2142_v3, 0.0  ;;  %v2145_v1 = vadd.f32 %v2144_v33, %v2096_v12  ;;  %v2632_v45 = vpop.f32.mrb[71].mxu0 }
 0x459   : > { %v2149_v29 = vmax.f32 %v2145_v1, 0.0  ;;  %v2162_v38 = vmul.f32 %v2155_v54, %v2148_v53 }
 0x45b   : > { %v2163_v27 = vmul.f32 %v2160_v24, %v2149_v29 }
 0x45d   : > { %v2164_v46 = vadd.f32 %v2163_v27, %v2162_v38 }
 0x45f   : > { %v2165_v10 = vrot.slane %v2164_v46, 4 }
 0x461   : > { %v2166_v9 = vadd.f32 %v2165_v10, %v2164_v46 }
 0x463   : > { %v2167_v32 = vrot.slane %v2166_v9, 2 }
 0x465   : > { %v2168_v17 = vadd.f32 %v2167_v32, %v2166_v9 }
 0x467   : > { %v2169_v44 = vrot.slane %v2168_v17, 1 }
 0x469   : > { %v2170_v15 = vadd.f32 %v2169_v44, %v2168_v17 }
 0x46b   : > { %v2181_v14 = vadd.f32 %v2180_v57, %v2170_v15 }
 0x46d   : > { %v2182_v28 = vmax.f32 %v2181_v14, -80.0 }
 0x46f   : > { %v2183_v36 = vsub.f32 0.0, %v2182_v28 }
 0x471   : > { %v2184_v55 = vmul.f32 1.442695, %v2183_v36 }
 0x473   : > { %2761 = vpow2.f32 %v2184_v55 }
 0x47d   : > { %v2762_v43 = vpop.eup %2761 }
 0x47e   : > { %v2186_v37 = vadd.f32 1.0, %v2762_v43 }
 0x480   : > { %2763 = vrcp.f32 %v2186_v37 }
 0x48a   : > { %v2764_v21 = vpop.eup %2763 }
 0x48b   : > { %2188 = vst [vmem:[%s378_s12] sm:$0x1] %v2764_v21 }
 0x48c   : > { %2778 = shalt.err (!%p2775_p3)
}
 0x48d   : > { %s2779_s25 = scalar_lea.hbm %s3680_s16, 16  ;;  %s2783_s12 = scalar_lea.hbm %s3733_s11, 32 }
 0x48e   : > { %p2780_p4 = scmp.ne.s32.totalorder %s3680_s16, %s2779_s25  ;;  %p2784_p9 = scmp.lt.u32.totalorder %s3680_s16, %s3733_s11 }
 0x48f   : > { %p2785_p10 = scmp.lt.u32.totalorder %s2783_s12, %s2779_s25  ;;  %p2787_p12 = scmp.lt.u32.totalorder %s2779_s25, %s3680_s16 }
 0x490   : > { %p2781_p7 = pnand %p2780_p4, %p2935_p5 }
 0x491   : > { %p2786_p11 = por %p2785_p10, %p2784_p9 }
 0x492   : > { %p2782_p8 = pneg %p2781_p7 }
 0x493   : > { %p2788_p13 = por %p2787_p12, %p2786_p11 }
 0x495   : > { %p2789_p0 = pnand %p2788_p13, %p2782_p8 }
 0x497   : > { %2792 = shalt.err (!%p2789_p0)
}
 0x498   : > { %2633 = dma.vmem_to_hbm [thread:$0]  (%p2935_p5), %s3682_s13, 16, %s3680_s16, %s2190_s17  }
 0x499 PF: > { %p2639_p1 = scmp.ge.s32.totalorder %s2827_s22, 2  ;;  %s2214_s18 = sand.u32 1, %s2815_s19  }
 0x49a   : > { %s2215_s10 = scalar_lea.sflag [#allocation4], %s2214_s18 }
 0x49b   : > { %p2636_p2 = pnand %p2639_p1, %p2939_p6 }
 0x49d   : > { %2810 = dma.done.wait (!%p2636_p2), %s2215_s10, 16  }
 0x49e   : > { %2812 = vsyncadd (!%p2636_p2), %s2215_s10, 4294967280  ;;  %p23_p3 = scmp.ge.s32.totalorder %s2922_s24, 4   ;;  %s3738_s19 = smov %s2819_s20 }
 0x49f   : > { %s3739_s20 = smov %s2823_s21  ;;  %s3740_s21 = smov %s2933_s27 }
 0x4a0   : > { %s3741_s22 = smov %s2922_s24  ;;  %25 = sbr.rel (!%p23_p3) target bundleno = 6 (0x6), region = 99 }
 0x4a7   :  { %2219 = vsyncpa [#allocation4], 1 }
 0x4a8   :  { %2221 = vsyncpa [#allocation4 + $0x1], 1 }

</bundles_post_ra>
